<compile_context>
chip_gen: v6e
topology: v6e:2x2x1
jax: 0.10.0
libtpu: 0.0.40
codegen_flags: <defaults>
</compile_context>

<pallas_src>
import functools

import jax
import jax.numpy as jnp
from jax.experimental import pallas as pl
from jax.experimental.pallas import tpu as pltpu


def _layer_norm(x, g, b, eps=1e-5):
    mu = jnp.mean(x, axis=-1, keepdims=True)
    var = jnp.mean((x - mu) ** 2, axis=-1, keepdims=True)
    return (x - mu) * jax.lax.rsqrt(var + eps) * g + b


def sakt_kernel(num_heads, with_attn, Bb, n, m,
                m_emb_ref, e_emb_ref,
                wq_ref, bq_ref, wk_ref, bk_ref, wv_ref, bv_ref,
                wo_h_ref, bo_ref,
                ln1_g_ref, ln1_b_ref,
                w1t_ref, b1_ref, w2t_ref, b2_ref,
                ln2_g_ref, ln2_b_ref,
                pred_w_ref, pred_b_ref,
                p_out_ref, *attn_refs):
    d = m_emb_ref.shape[-1]
    hd = d // num_heads
    scale = 1.0 / (float(hd) ** 0.5)

    Mb = m_emb_ref[...]                        # [Bb*n, d] bf16  (M(x)+P, added in glue)
    Eb = e_emb_ref[...]                        # [Bb*m, d] bf16
    Mf = Mb.astype(jnp.float32)
    Ef = Eb.astype(jnp.float32)

    # Q/K/V projections as wide [Bb*seq, d] x [d, d] bf16 matmuls (f32 acc).
    Q = (jnp.dot(Eb, wq_ref[...], preferred_element_type=jnp.float32)
         + bq_ref[...]) * scale
    K = jnp.dot(Mb, wk_ref[...], preferred_element_type=jnp.float32) + bk_ref[...]
    V = jnp.dot(Mb, wv_ref[...], preferred_element_type=jnp.float32) + bv_ref[...]

    # Batched per-head attention: one einsum over the whole batch block per head.
    Q3 = Q.reshape(Bb, m, d).astype(jnp.bfloat16)
    K3 = K.reshape(Bb, n, d).astype(jnp.bfloat16)
    V3 = V.reshape(Bb, n, d).astype(jnp.bfloat16)

    rows = jax.lax.broadcasted_iota(jnp.int32, (1, m, n), 1)
    cols = jax.lax.broadcasted_iota(jnp.int32, (1, m, n), 2)
    causal = cols > rows                       # True == masked (triu, diagonal=1)

    s_attn = jnp.zeros((Bb * m, d), jnp.float32)
    attn_sum = jnp.zeros((Bb, m, n), jnp.float32)
    for h in range(num_heads):                 # small static loop over heads only
        lo = h * hd
        qh = Q3[:, :, lo:lo + hd]              # [Bb, m, hd]
        kh = K3[:, :, lo:lo + hd]              # [Bb, n, hd]
        vh = V3[:, :, lo:lo + hd]              # [Bb, n, hd]
        s = jnp.einsum('bqk,bnk->bqn', qh, kh,
                       preferred_element_type=jnp.float32)        # [Bb, m, n]
        s = jnp.where(causal, jnp.float32(-1e30), s)
        s = s - jnp.max(s, axis=-1, keepdims=True)
        e = jnp.exp(s)
        a = e * pl.reciprocal(jnp.sum(e, axis=-1, keepdims=True), approx=True)
        ctx = jnp.einsum('bqn,bnk->bqk', a.astype(jnp.bfloat16), vh,
                         preferred_element_type=jnp.float32)      # [Bb, m, hd]
        # Accumulate the out-projection per head (no lane-axis concat of heads).
        s_attn = s_attn + jnp.dot(
            ctx.reshape(Bb * m, hd).astype(jnp.bfloat16), wo_h_ref[h],
            preferred_element_type=jnp.float32)
        if with_attn:
            attn_sum = attn_sum + a

    S_attn = s_attn + bo_ref[...]
    S = _layer_norm(S_attn + Mf + Ef, ln1_g_ref[...], ln1_b_ref[...])

    h1 = jnp.maximum(
        jnp.dot(S.astype(jnp.bfloat16), w1t_ref[...],
                preferred_element_type=jnp.float32) + b1_ref[...], 0.0)
    f = jnp.dot(h1.astype(jnp.bfloat16), w2t_ref[...],
                preferred_element_type=jnp.float32) + b2_ref[...]
    F = _layer_norm(f + S, ln2_g_ref[...], ln2_b_ref[...])

    # pred: Linear(d, 1) + sigmoid, emitted as a lane-dense [1, Bb*m] row.
    trans_b = (((1,), (1,)), ((), ()))          # contract last dims (A @ B^T)
    logit = jax.lax.dot_general(pred_w_ref[...], F, trans_b,
                                preferred_element_type=jnp.float32)
    logit = logit + pred_b_ref[0, 0]
    p_out_ref[0] = jax.nn.sigmoid(logit)

    if with_attn:
        # Single bulk store of the head-averaged attention weights per grid step.
        attn_refs[0][...] = attn_sum * (1.0 / num_heads)


def _pick_block_b(B, n, m, d, *, target_rows=512, max_block_bytes=8 << 20):
    """Batch elements per grid step: target ~512 matmul rows (amortizes the
    ~0.35us/step overhead, feeds the 256-wide MXU), keep the grid >= 2 where
    possible (both v7x TensorCores), cap the streamed per-step block well below
    v7x's 64 MiB VMEM, and keep the flattened [Bb*seq, d] blocks sublane-aligned."""
    divisors = [i for i in range(1, B + 1) if B % i == 0]

    def valid(bb):
        aligned = (B // bb == 1) or ((bb * n) % 8 == 0 and (bb * m) % 8 == 0)
        blk_bytes = bb * (n + m) * d * 2 + bb * m * n * 4
        return aligned and (blk_bytes <= max_block_bytes or bb == 1)

    valid_divs = [i for i in divisors if valid(i)] or [B]
    fitting = ([i for i in valid_divs if i * max(n, m) <= target_rows]
               or [min(valid_divs)])
    bb = max(fitting)
    if B // bb < 2 and B > 1:
        smaller = [i for i in valid_divs if i < B]
        if smaller:
            bb = max(smaller)
    return bb


def sakt_forward(q, r, qry, params, num_q, num_heads, *, block_b=None,
                 return_attn_weights=True):
    B, n = q.shape
    m = qry.shape[1]
    d = params["P"].shape[1]
    assert m == n, "SAKT forward assumes query length == interaction length"
    assert d % num_heads == 0
    hd = d // num_heads

    if block_b is None:
        block_b = _pick_block_b(B, n, m, d)
    assert B % block_b == 0, (B, block_b)
    Bb = block_b
    nblk = B // Bb
    assert nblk == 1 or ((Bb * n) % 8 == 0 and (Bb * m) % 8 == 0), (Bb, n, m)

    # --- glue: embedding gathers (+P), flattening, weight transposes / bf16 casts ---
    x = q + num_q * r
    m_emb = (jnp.take(params["M_table"], x, axis=0).astype(jnp.float32)
             + params["P"][None]).astype(jnp.bfloat16).reshape(B * n, d)
    e_emb = jnp.take(params["E_table"], qry, axis=0).astype(
        jnp.bfloat16).reshape(B * m, d)

    Wi, bi = params["in_proj_w"], params["in_proj_b"]        # [3d, d], [1, 3d]
    wq_t = Wi[0:d].T.astype(jnp.bfloat16)                    # [d, d]  (y = x W^T)
    wk_t = Wi[d:2 * d].T.astype(jnp.bfloat16)
    wv_t = Wi[2 * d:3 * d].T.astype(jnp.bfloat16)
    bq, bk, bv = bi[:, 0:d], bi[:, d:2 * d], bi[:, 2 * d:3 * d]
    wo_heads = params["out_proj_w"].T.reshape(
        num_heads, hd, d).astype(jnp.bfloat16)               # per-head W_o^T slabs
    w1t = params["ffn_w1"].T.astype(jnp.bfloat16)
    w2t = params["ffn_w2"].T.astype(jnp.bfloat16)

    kernel = functools.partial(sakt_kernel, num_heads, return_attn_weights,
                               Bb, n, m)

    def const(shape):
        nd = len(shape)
        return pl.BlockSpec(shape, lambda b, _nd=nd: (0,) * _nd)

    in_specs = [
        pl.BlockSpec((Bb * n, d), lambda b: (b, 0)),          # m_emb (pre-flattened)
        pl.BlockSpec((Bb * m, d), lambda b: (b, 0)),          # e_emb (pre-flattened)
        const((d, d)), const((1, d)),                         # Wq^T, bq
        const((d, d)), const((1, d)),                         # Wk^T, bk
        const((d, d)), const((1, d)),                         # Wv^T, bv
        const((num_heads, hd, d)), const((1, d)),             # Wo^T per head, bo
        const((1, d)), const((1, d)),                         # attn LN gamma/beta
        const((d, d)), const((1, d)),                         # FFN lin1
        const((d, d)), const((1, d)),                         # FFN lin2
        const((1, d)), const((1, d)),                         # FFN LN gamma/beta
        const((1, d)),                                        # pred weight
        pl.BlockSpec(memory_space=pltpu.MemorySpace.SMEM),    # pred bias (scalar)
    ]
    out_specs = [pl.BlockSpec((1, 1, Bb * m), lambda b: (b, 0, 0))]
    out_shape = [jax.ShapeDtypeStruct((nblk, 1, Bb * m), jnp.float32)]
    if return_attn_weights:
        out_specs.append(pl.BlockSpec((Bb, m, n), lambda b: (b, 0, 0)))
        out_shape.append(jax.ShapeDtypeStruct((B, m, n), jnp.float32))

    grid_spec = pltpu.PrefetchScalarGridSpec(
        num_scalar_prefetch=0, grid=(nblk,),
        in_specs=in_specs, out_specs=out_specs)

    # VMEM budget: double-buffered streamed slabs + output blocks + weights.
    slab = 2 * (Bb * n * d + Bb * m * d) * 2
    outs_b = 2 * Bb * m * 4 + (2 * Bb * m * n * 4 if return_attn_weights else 0)
    wts = (6 * d * d + 14 * d) * 4
    vmem_limit = int(min(48 << 20, max(32 << 20, 3 * (slab + outs_b + wts))))

    outs = pl.pallas_call(
        kernel,
        grid_spec=grid_spec,
        out_shape=tuple(out_shape),
        compiler_params=pltpu.CompilerParams(
            dimension_semantics=("parallel",),
            vmem_limit_bytes=vmem_limit),
    )(m_emb, e_emb,
      wq_t, bq, wk_t, bk, wv_t, bv,
      wo_heads, params["out_proj_b"],
      params["ln1_g"], params["ln1_b"],
      w1t, params["ffn_b1"], w2t, params["ffn_b2"],
      params["ln2_g"], params["ln2_b"],
      params["pred_w"], params["pred_b"])

    p = outs[0].reshape(B, m)                  # rows are batch-major inside a block
    attn_w = outs[1] if return_attn_weights else None
    return p, attn_w


def init_params(key, num_q, n, d):
    ks = jax.random.split(key, 10)

    def normal(k, shape, scale):
        return (scale * jax.random.normal(k, shape)).astype(jnp.float32)

    return {
        # Embedding tables kept bf16 in HBM: the gathered [B, seq, d] slabs (the
        # kernel's main streamed traffic) DMA half the bytes.
        "M_table": normal(ks[0], (num_q * 2, d), 0.1).astype(jnp.bfloat16),
        "E_table": normal(ks[1], (num_q, d), 0.1).astype(jnp.bfloat16),
        "P": normal(ks[2], (n, d), (2.0 / d) ** 0.5),        # kaiming_normal_
        "in_proj_w": normal(ks[3], (3 * d, d), d ** -0.5),
        "in_proj_b": jnp.zeros((1, 3 * d), jnp.float32),
        "out_proj_w": normal(ks[4], (d, d), d ** -0.5),
        "out_proj_b": jnp.zeros((1, d), jnp.float32),
        "ln1_g": jnp.ones((1, d), jnp.float32),
        "ln1_b": jnp.zeros((1, d), jnp.float32),
        "ffn_w1": normal(ks[5], (d, d), d ** -0.5),
        "ffn_b1": normal(ks[6], (1, d), 0.01),
        "ffn_w2": normal(ks[7], (d, d), d ** -0.5),
        "ffn_b2": normal(ks[8], (1, d), 0.01),
        "ln2_g": jnp.ones((1, d), jnp.float32),
        "ln2_b": jnp.zeros((1, d), jnp.float32),
        "pred_w": normal(ks[9], (1, d), d ** -0.5),
        "pred_b": jnp.zeros((1, 1), jnp.float32),
    }


def sakt_reference(q, r, qry, params, num_q, num_heads):
    """Pure-JAX f32 reference mirroring the PyTorch forward (inference mode)."""
    d = params["P"].shape[1]
    hd = d // num_heads
    x = q + num_q * r
    M = jnp.take(params["M_table"], x, axis=0).astype(jnp.float32) + params["P"][None]
    E = jnp.take(params["E_table"], qry, axis=0).astype(jnp.float32)
    B, n, _ = M.shape
    m = E.shape[1]

    Wi, bi = params["in_proj_w"], params["in_proj_b"][0]
    Q = jnp.einsum("bmd,ed->bme", E, Wi[0:d]) + bi[0:d]
    K = jnp.einsum("bnd,ed->bne", M, Wi[d:2 * d]) + bi[d:2 * d]
    V = jnp.einsum("bnd,ed->bne", M, Wi[2 * d:3 * d]) + bi[2 * d:3 * d]
    Qh = Q.reshape(B, m, num_heads, hd).transpose(0, 2, 1, 3)
    Kh = K.reshape(B, n, num_heads, hd).transpose(0, 2, 1, 3)
    Vh = V.reshape(B, n, num_heads, hd).transpose(0, 2, 1, 3)
    s = jnp.einsum("bhmk,bhnk->bhmn", Qh, Kh) / jnp.sqrt(float(hd))
    mask = jnp.triu(jnp.ones((m, n), bool), k=1)
    s = jnp.where(mask[None, None], -jnp.inf, s)
    a = jax.nn.softmax(s, axis=-1)
    ctx = jnp.einsum("bhmn,bhnk->bhmk", a, Vh).transpose(0, 2, 1, 3).reshape(B, m, d)
    S = ctx @ params["out_proj_w"].T + params["out_proj_b"][0]

    def ln(v, g, b, eps=1e-5):
        mu = v.mean(-1, keepdims=True)
        var = ((v - mu) ** 2).mean(-1, keepdims=True)
        return (v - mu) / jnp.sqrt(var + eps) * g + b

    S = ln(S + M + E, params["ln1_g"][0], params["ln1_b"][0])
    h1 = jax.nn.relu(S @ params["ffn_w1"].T + params["ffn_b1"][0])
    f = h1 @ params["ffn_w2"].T + params["ffn_b2"][0]
    F = ln(f + S, params["ln2_g"][0], params["ln2_b"][0])
    p = jax.nn.sigmoid(jnp.einsum("bmd,d->bm", F, params["pred_w"][0])
                       + params["pred_b"][0, 0])
    return p, a.mean(axis=1)


if __name__ == "__main__":
    num_q, n, d, num_heads = 16, 8, 32, 4
    B = 4

    key = jax.random.PRNGKey(0)
    kq, kr, kqry, kp = jax.random.split(key, 4)
    q = jax.random.randint(kq, (B, n), 0, num_q)
    r = jax.random.randint(kr, (B, n), 0, 2)
    qry = jax.random.randint(kqry, (B, n), 0, num_q)
    params = init_params(kp, num_q, n, d)

    p, attn_w = sakt_forward(q, r, qry, params, num_q, num_heads)
    jax.block_until_ready((p, attn_w))

    assert p.shape == (B, n), p.shape
    assert attn_w.shape == (B, n, n), attn_w.shape
    assert bool(jnp.all(jnp.isfinite(p))) and bool(jnp.all(jnp.isfinite(attn_w)))

    # Compare against a pure-JAX f32 reference (kernel feeds the MXU bf16, so
    # use a loose tolerance).
    p_ref, attn_ref = sakt_reference(q, r, qry, params, num_q, num_heads)
    assert float(jnp.max(jnp.abs(p - p_ref))) < 5e-2
    assert float(jnp.max(jnp.abs(attn_w - attn_ref))) < 5e-2

    print("KERNEL_OK")
</pallas_src>

<mosaic_0001>
module attributes {stable_mosaic.version = 11 : i64} {
  func.func @sakt_kernel(%arg0: i32, %arg1: memref<16x32xbf16, #tpu.memory_space<vmem>>, %arg2: memref<16x32xbf16, #tpu.memory_space<vmem>>, %arg3: memref<32x32xbf16, #tpu.memory_space<vmem>>, %arg4: memref<1x32xf32, #tpu.memory_space<vmem>>, %arg5: memref<32x32xbf16, #tpu.memory_space<vmem>>, %arg6: memref<1x32xf32, #tpu.memory_space<vmem>>, %arg7: memref<32x32xbf16, #tpu.memory_space<vmem>>, %arg8: memref<1x32xf32, #tpu.memory_space<vmem>>, %arg9: memref<4x8x32xbf16, #tpu.memory_space<vmem>>, %arg10: memref<1x32xf32, #tpu.memory_space<vmem>>, %arg11: memref<1x32xf32, #tpu.memory_space<vmem>>, %arg12: memref<1x32xf32, #tpu.memory_space<vmem>>, %arg13: memref<32x32xbf16, #tpu.memory_space<vmem>>, %arg14: memref<1x32xf32, #tpu.memory_space<vmem>>, %arg15: memref<32x32xbf16, #tpu.memory_space<vmem>>, %arg16: memref<1x32xf32, #tpu.memory_space<vmem>>, %arg17: memref<1x32xf32, #tpu.memory_space<vmem>>, %arg18: memref<1x32xf32, #tpu.memory_space<vmem>>, %arg19: memref<1x32xf32, #tpu.memory_space<vmem>>, %arg20: memref<1x1xf32, #tpu.memory_space<smem>>, %arg21: memref<1x1x16xf32, #tpu.memory_space<vmem>>, %arg22: memref<2x8x8xf32, #tpu.memory_space<vmem>>) attributes {dimension_semantics = [#tpu.dimension_semantics<parallel>], iteration_bounds = array<i64: 2>, scalar_prefetch = 0 : i64, scratch_operands = 0 : i64, tpu.core_type = #tpu.core_type<tc>, window_params = [{transform_indices = @transform_0, window_bounds = array<i64: 16, 32>}, {transform_indices = @transform_1, window_bounds = array<i64: 16, 32>}, {pipeline_mode = #tpu.pipeline_mode<synchronous>, transform_indices = @transform_2, window_bounds = array<i64: 32, 32>}, {pipeline_mode = #tpu.pipeline_mode<synchronous>, transform_indices = @transform_3, window_bounds = array<i64: 1, 32>}, {pipeline_mode = #tpu.pipeline_mode<synchronous>, transform_indices = @transform_4, window_bounds = array<i64: 32, 32>}, {pipeline_mode = #tpu.pipeline_mode<synchronous>, transform_indices = @transform_5, window_bounds = array<i64: 1, 32>}, {pipeline_mode = #tpu.pipeline_mode<synchronous>, transform_indices = @transform_6, window_bounds = array<i64: 32, 32>}, {pipeline_mode = #tpu.pipeline_mode<synchronous>, transform_indices = @transform_7, window_bounds = array<i64: 1, 32>}, {pipeline_mode = #tpu.pipeline_mode<synchronous>, transform_indices = @transform_8, window_bounds = array<i64: 4, 8, 32>}, {pipeline_mode = #tpu.pipeline_mode<synchronous>, transform_indices = @transform_9, window_bounds = array<i64: 1, 32>}, {pipeline_mode = #tpu.pipeline_mode<synchronous>, transform_indices = @transform_10, window_bounds = array<i64: 1, 32>}, {pipeline_mode = #tpu.pipeline_mode<synchronous>, transform_indices = @transform_11, window_bounds = array<i64: 1, 32>}, {pipeline_mode = #tpu.pipeline_mode<synchronous>, transform_indices = @transform_12, window_bounds = array<i64: 32, 32>}, {pipeline_mode = #tpu.pipeline_mode<synchronous>, transform_indices = @transform_13, window_bounds = array<i64: 1, 32>}, {pipeline_mode = #tpu.pipeline_mode<synchronous>, transform_indices = @transform_14, window_bounds = array<i64: 32, 32>}, {pipeline_mode = #tpu.pipeline_mode<synchronous>, transform_indices = @transform_15, window_bounds = array<i64: 1, 32>}, {pipeline_mode = #tpu.pipeline_mode<synchronous>, transform_indices = @transform_16, window_bounds = array<i64: 1, 32>}, {pipeline_mode = #tpu.pipeline_mode<synchronous>, transform_indices = @transform_17, window_bounds = array<i64: 1, 32>}, {pipeline_mode = #tpu.pipeline_mode<synchronous>, transform_indices = @transform_18, window_bounds = array<i64: 1, 32>}, {transform_indices = @transform_19, window_bounds = array<i64: 1, 1>}, {transform_indices = @transform_20, window_bounds = array<i64: 1, 1, 16>}, {transform_indices = @transform_21, window_bounds = array<i64: 2, 8, 8>}]} {
    %c0 = arith.constant 0 : index
    %c0_0 = arith.constant 0 : index
    %0 = vector.load %arg1[%c0, %c0_0] : memref<16x32xbf16, #tpu.memory_space<vmem>>, vector<16x32xbf16>
    %c0_1 = arith.constant 0 : index
    %c0_2 = arith.constant 0 : index
    %1 = vector.load %arg2[%c0_1, %c0_2] : memref<16x32xbf16, #tpu.memory_space<vmem>>, vector<16x32xbf16>
    %2 = arith.extf %0 : vector<16x32xbf16> to vector<16x32xf32>
    %3 = arith.extf %1 : vector<16x32xbf16> to vector<16x32xf32>
    %c0_3 = arith.constant 0 : index
    %c0_4 = arith.constant 0 : index
    %4 = vector.load %arg3[%c0_3, %c0_4] : memref<32x32xbf16, #tpu.memory_space<vmem>>, vector<32x32xbf16>
    %cst = arith.constant dense<0.000000e+00> : vector<16x32xf32>
    %5 = tpu.matmul %1, %4, %cst {dimension_numbers = #tpu.dot_dimension_numbers<[1], [0], [0], [1], [0, 0, 1, 1], [], []>} : vector<16x32xbf16>, vector<32x32xbf16>, vector<16x32xf32> -> vector<16x32xf32>
    %c0_5 = arith.constant 0 : index
    %c0_6 = arith.constant 0 : index
    %6 = vector.load %arg4[%c0_5, %c0_6] : memref<1x32xf32, #tpu.memory_space<vmem>>, vector<1x32xf32>
    %7 = vector.broadcast %6 : vector<1x32xf32> to vector<16x32xf32>
    %8 = arith.addf %5, %7 : vector<16x32xf32>
    %cst_7 = arith.constant 0.353553385 : f32
    %9 = vector.broadcast %cst_7 : f32 to vector<16x32xf32>
    %10 = arith.mulf %8, %9 : vector<16x32xf32>
    %c0_8 = arith.constant 0 : index
    %c0_9 = arith.constant 0 : index
    %11 = vector.load %arg5[%c0_8, %c0_9] : memref<32x32xbf16, #tpu.memory_space<vmem>>, vector<32x32xbf16>
    %cst_10 = arith.constant dense<0.000000e+00> : vector<16x32xf32>
    %12 = tpu.matmul %0, %11, %cst_10 {dimension_numbers = #tpu.dot_dimension_numbers<[1], [0], [0], [1], [0, 0, 1, 1], [], []>} : vector<16x32xbf16>, vector<32x32xbf16>, vector<16x32xf32> -> vector<16x32xf32>
    %c0_11 = arith.constant 0 : index
    %c0_12 = arith.constant 0 : index
    %13 = vector.load %arg6[%c0_11, %c0_12] : memref<1x32xf32, #tpu.memory_space<vmem>>, vector<1x32xf32>
    %14 = vector.broadcast %13 : vector<1x32xf32> to vector<16x32xf32>
    %15 = arith.addf %12, %14 : vector<16x32xf32>
    %c0_13 = arith.constant 0 : index
    %c0_14 = arith.constant 0 : index
    %16 = vector.load %arg7[%c0_13, %c0_14] : memref<32x32xbf16, #tpu.memory_space<vmem>>, vector<32x32xbf16>
    %cst_15 = arith.constant dense<0.000000e+00> : vector<16x32xf32>
    %17 = tpu.matmul %0, %16, %cst_15 {dimension_numbers = #tpu.dot_dimension_numbers<[1], [0], [0], [1], [0, 0, 1, 1], [], []>} : vector<16x32xbf16>, vector<32x32xbf16>, vector<16x32xf32> -> vector<16x32xf32>
    %c0_16 = arith.constant 0 : index
    %c0_17 = arith.constant 0 : index
    %18 = vector.load %arg8[%c0_16, %c0_17] : memref<1x32xf32, #tpu.memory_space<vmem>>, vector<1x32xf32>
    %19 = vector.broadcast %18 : vector<1x32xf32> to vector<16x32xf32>
    %20 = arith.addf %17, %19 : vector<16x32xf32>
    %21 = vector.shape_cast %10 : vector<16x32xf32> to vector<2x8x32xf32>
    %22 = arith.truncf %21 : vector<2x8x32xf32> to vector<2x8x32xbf16>
    %23 = vector.shape_cast %15 : vector<16x32xf32> to vector<2x8x32xf32>
    %24 = arith.truncf %23 : vector<2x8x32xf32> to vector<2x8x32xbf16>
    %25 = vector.shape_cast %20 : vector<16x32xf32> to vector<2x8x32xf32>
    %26 = arith.truncf %25 : vector<2x8x32xf32> to vector<2x8x32xbf16>
    %27 = tpu.iota {dimensions = array<i32: 1>} : vector<1x8x8xi32>
    %28 = tpu.iota {dimensions = array<i32: 2>} : vector<1x8x8xi32>
    %29 = arith.cmpi sgt, %28, %27 : vector<1x8x8xi32>
    %cst_18 = arith.constant 0.000000e+00 : f32
    %30 = vector.broadcast %cst_18 : f32 to vector<16x32xf32>
    %cst_19 = arith.constant 0.000000e+00 : f32
    %31 = vector.broadcast %cst_19 : f32 to vector<2x8x8xf32>
    %32 = vector.extract_strided_slice %22 {offsets = [0, 0, 0], sizes = [2, 8, 8], strides = [1, 1, 1]} : vector<2x8x32xbf16> to vector<2x8x8xbf16>
    %33 = vector.extract_strided_slice %24 {offsets = [0, 0, 0], sizes = [2, 8, 8], strides = [1, 1, 1]} : vector<2x8x32xbf16> to vector<2x8x8xbf16>
    %34 = vector.extract_strided_slice %26 {offsets = [0, 0, 0], sizes = [2, 8, 8], strides = [1, 1, 1]} : vector<2x8x32xbf16> to vector<2x8x8xbf16>
    "tpu.trace_start"() <{level = 10 : i32, message = "bqk,bnk->bqn"}> : () -> ()
    %cst_20 = arith.constant dense<0.000000e+00> : vector<2x8x8xf32>
    %35 = tpu.matmul %32, %33, %cst_20 {dimension_numbers = #tpu.dot_dimension_numbers<[2], [2], [1], [1], [0, 0, 0, 1, 1, 1], [0], [0]>} : vector<2x8x8xbf16>, vector<2x8x8xbf16>, vector<2x8x8xf32> -> vector<2x8x8xf32>
    %cst_21 = arith.constant -1.000000e+30 : f32
    "tpu.trace_stop"() : () -> ()
    %36 = vector.shape_cast %29 : vector<1x8x8xi1> to vector<1x8x8xi1>
    %37 = vector.broadcast %36 : vector<1x8x8xi1> to vector<2x8x8xi1>
    %38 = vector.broadcast %cst_21 : f32 to vector<2x8x8xf32>
    %39 = arith.select %37, %38, %35 : vector<2x8x8xi1>, vector<2x8x8xf32>
    %cst_22 = arith.constant dense<0xFF800000> : vector<2x8xf32>
    %40 = vector.multi_reduction <maximumf>, %39, %cst_22 [2] : vector<2x8x8xf32> to vector<2x8xf32>
    %41 = vector.shape_cast %40 : vector<2x8xf32> to vector<2x8x1xf32>
    %42 = vector.broadcast %41 : vector<2x8x1xf32> to vector<2x8x8xf32>
    %43 = arith.subf %39, %42 : vector<2x8x8xf32>
    %44 = math.exp %43 : vector<2x8x8xf32>
    %cst_23 = arith.constant dense<0.000000e+00> : vector<2x8xf32>
    %45 = vector.multi_reduction <add>, %44, %cst_23 [2] : vector<2x8x8xf32> to vector<2x8xf32>
    %46 = vector.shape_cast %45 : vector<2x8xf32> to vector<2x8x1xf32>
    %47 = tpu.reciprocal %46 {approx = true} : vector<2x8x1xf32> -> vector<2x8x1xf32>
    %48 = vector.broadcast %47 : vector<2x8x1xf32> to vector<2x8x8xf32>
    %49 = arith.mulf %44, %48 : vector<2x8x8xf32>
    %50 = arith.truncf %49 : vector<2x8x8xf32> to vector<2x8x8xbf16>
    "tpu.trace_start"() <{level = 10 : i32, message = "bqn,bnk->bqk"}> : () -> ()
    %cst_24 = arith.constant dense<0.000000e+00> : vector<2x8x8xf32>
    %51 = tpu.matmul %50, %34, %cst_24 {dimension_numbers = #tpu.dot_dimension_numbers<[2], [1], [1], [2], [0, 0, 0, 1, 1, 2], [0], [0]>} : vector<2x8x8xbf16>, vector<2x8x8xbf16>, vector<2x8x8xf32> -> vector<2x8x8xf32>
    "tpu.trace_stop"() : () -> ()
    %52 = vector.shape_cast %51 : vector<2x8x8xf32> to vector<16x8xf32>
    %53 = arith.truncf %52 : vector<16x8xf32> to vector<16x8xbf16>
    %c0_25 = arith.constant 0 : index
    %c0_26 = arith.constant 0 : index
    %c0_27 = arith.constant 0 : index
    %54 = vector.load %arg9[%c0_25, %c0_26, %c0_27] : memref<4x8x32xbf16, #tpu.memory_space<vmem>>, vector<1x8x32xbf16>
    %55 = vector.shape_cast %54 : vector<1x8x32xbf16> to vector<8x32xbf16>
    %cst_28 = arith.constant dense<0.000000e+00> : vector<16x32xf32>
    %56 = tpu.matmul %53, %55, %cst_28 {dimension_numbers = #tpu.dot_dimension_numbers<[1], [0], [0], [1], [0, 0, 1, 1], [], []>} : vector<16x8xbf16>, vector<8x32xbf16>, vector<16x32xf32> -> vector<16x32xf32>
    %57 = arith.addf %30, %56 : vector<16x32xf32>
    %58 = arith.addf %31, %49 : vector<2x8x8xf32>
    %59 = vector.extract_strided_slice %22 {offsets = [0, 0, 8], sizes = [2, 8, 8], strides = [1, 1, 1]} : vector<2x8x32xbf16> to vector<2x8x8xbf16>
    %60 = vector.extract_strided_slice %24 {offsets = [0, 0, 8], sizes = [2, 8, 8], strides = [1, 1, 1]} : vector<2x8x32xbf16> to vector<2x8x8xbf16>
    %61 = vector.extract_strided_slice %26 {offsets = [0, 0, 8], sizes = [2, 8, 8], strides = [1, 1, 1]} : vector<2x8x32xbf16> to vector<2x8x8xbf16>
    "tpu.trace_start"() <{level = 10 : i32, message = "bqk,bnk->bqn"}> : () -> ()
    %cst_29 = arith.constant dense<0.000000e+00> : vector<2x8x8xf32>
    %62 = tpu.matmul %59, %60, %cst_29 {dimension_numbers = #tpu.dot_dimension_numbers<[2], [2], [1], [1], [0, 0, 0, 1, 1, 1], [0], [0]>} : vector<2x8x8xbf16>, vector<2x8x8xbf16>, vector<2x8x8xf32> -> vector<2x8x8xf32>
    %cst_30 = arith.constant -1.000000e+30 : f32
    "tpu.trace_stop"() : () -> ()
    %63 = vector.shape_cast %29 : vector<1x8x8xi1> to vector<1x8x8xi1>
    %64 = vector.broadcast %63 : vector<1x8x8xi1> to vector<2x8x8xi1>
    %65 = vector.broadcast %cst_30 : f32 to vector<2x8x8xf32>
    %66 = arith.select %64, %65, %62 : vector<2x8x8xi1>, vector<2x8x8xf32>
    %cst_31 = arith.constant dense<0xFF800000> : vector<2x8xf32>
    %67 = vector.multi_reduction <maximumf>, %66, %cst_31 [2] : vector<2x8x8xf32> to vector<2x8xf32>
    %68 = vector.shape_cast %67 : vector<2x8xf32> to vector<2x8x1xf32>
    %69 = vector.broadcast %68 : vector<2x8x1xf32> to vector<2x8x8xf32>
    %70 = arith.subf %66, %69 : vector<2x8x8xf32>
    %71 = math.exp %70 : vector<2x8x8xf32>
    %cst_32 = arith.constant dense<0.000000e+00> : vector<2x8xf32>
    %72 = vector.multi_reduction <add>, %71, %cst_32 [2] : vector<2x8x8xf32> to vector<2x8xf32>
    %73 = vector.shape_cast %72 : vector<2x8xf32> to vector<2x8x1xf32>
    %74 = tpu.reciprocal %73 {approx = true} : vector<2x8x1xf32> -> vector<2x8x1xf32>
    %75 = vector.broadcast %74 : vector<2x8x1xf32> to vector<2x8x8xf32>
    %76 = arith.mulf %71, %75 : vector<2x8x8xf32>
    %77 = arith.truncf %76 : vector<2x8x8xf32> to vector<2x8x8xbf16>
    "tpu.trace_start"() <{level = 10 : i32, message = "bqn,bnk->bqk"}> : () -> ()
    %cst_33 = arith.constant dense<0.000000e+00> : vector<2x8x8xf32>
    %78 = tpu.matmul %77, %61, %cst_33 {dimension_numbers = #tpu.dot_dimension_numbers<[2], [1], [1], [2], [0, 0, 0, 1, 1, 2], [0], [0]>} : vector<2x8x8xbf16>, vector<2x8x8xbf16>, vector<2x8x8xf32> -> vector<2x8x8xf32>
    "tpu.trace_stop"() : () -> ()
    %79 = vector.shape_cast %78 : vector<2x8x8xf32> to vector<16x8xf32>
    %80 = arith.truncf %79 : vector<16x8xf32> to vector<16x8xbf16>
    %c1 = arith.constant 1 : index
    %c0_34 = arith.constant 0 : index
    %c0_35 = arith.constant 0 : index
    %81 = vector.load %arg9[%c1, %c0_34, %c0_35] : memref<4x8x32xbf16, #tpu.memory_space<vmem>>, vector<1x8x32xbf16>
    %82 = vector.shape_cast %81 : vector<1x8x32xbf16> to vector<8x32xbf16>
    %cst_36 = arith.constant dense<0.000000e+00> : vector<16x32xf32>
    %83 = tpu.matmul %80, %82, %cst_36 {dimension_numbers = #tpu.dot_dimension_numbers<[1], [0], [0], [1], [0, 0, 1, 1], [], []>} : vector<16x8xbf16>, vector<8x32xbf16>, vector<16x32xf32> -> vector<16x32xf32>
    %84 = arith.addf %57, %83 : vector<16x32xf32>
    %85 = arith.addf %58, %76 : vector<2x8x8xf32>
    %86 = vector.extract_strided_slice %22 {offsets = [0, 0, 16], sizes = [2, 8, 8], strides = [1, 1, 1]} : vector<2x8x32xbf16> to vector<2x8x8xbf16>
    %87 = vector.extract_strided_slice %24 {offsets = [0, 0, 16], sizes = [2, 8, 8], strides = [1, 1, 1]} : vector<2x8x32xbf16> to vector<2x8x8xbf16>
    %88 = vector.extract_strided_slice %26 {offsets = [0, 0, 16], sizes = [2, 8, 8], strides = [1, 1, 1]} : vector<2x8x32xbf16> to vector<2x8x8xbf16>
    "tpu.trace_start"() <{level = 10 : i32, message = "bqk,bnk->bqn"}> : () -> ()
    %cst_37 = arith.constant dense<0.000000e+00> : vector<2x8x8xf32>
    %89 = tpu.matmul %86, %87, %cst_37 {dimension_numbers = #tpu.dot_dimension_numbers<[2], [2], [1], [1], [0, 0, 0, 1, 1, 1], [0], [0]>} : vector<2x8x8xbf16>, vector<2x8x8xbf16>, vector<2x8x8xf32> -> vector<2x8x8xf32>
    %cst_38 = arith.constant -1.000000e+30 : f32
    "tpu.trace_stop"() : () -> ()
    %90 = vector.shape_cast %29 : vector<1x8x8xi1> to vector<1x8x8xi1>
    %91 = vector.broadcast %90 : vector<1x8x8xi1> to vector<2x8x8xi1>
    %92 = vector.broadcast %cst_38 : f32 to vector<2x8x8xf32>
    %93 = arith.select %91, %92, %89 : vector<2x8x8xi1>, vector<2x8x8xf32>
    %cst_39 = arith.constant dense<0xFF800000> : vector<2x8xf32>
    %94 = vector.multi_reduction <maximumf>, %93, %cst_39 [2] : vector<2x8x8xf32> to vector<2x8xf32>
    %95 = vector.shape_cast %94 : vector<2x8xf32> to vector<2x8x1xf32>
    %96 = vector.broadcast %95 : vector<2x8x1xf32> to vector<2x8x8xf32>
    %97 = arith.subf %93, %96 : vector<2x8x8xf32>
    %98 = math.exp %97 : vector<2x8x8xf32>
    %cst_40 = arith.constant dense<0.000000e+00> : vector<2x8xf32>
    %99 = vector.multi_reduction <add>, %98, %cst_40 [2] : vector<2x8x8xf32> to vector<2x8xf32>
    %100 = vector.shape_cast %99 : vector<2x8xf32> to vector<2x8x1xf32>
    %101 = tpu.reciprocal %100 {approx = true} : vector<2x8x1xf32> -> vector<2x8x1xf32>
    %102 = vector.broadcast %101 : vector<2x8x1xf32> to vector<2x8x8xf32>
    %103 = arith.mulf %98, %102 : vector<2x8x8xf32>
    %104 = arith.truncf %103 : vector<2x8x8xf32> to vector<2x8x8xbf16>
    "tpu.trace_start"() <{level = 10 : i32, message = "bqn,bnk->bqk"}> : () -> ()
    %cst_41 = arith.constant dense<0.000000e+00> : vector<2x8x8xf32>
    %105 = tpu.matmul %104, %88, %cst_41 {dimension_numbers = #tpu.dot_dimension_numbers<[2], [1], [1], [2], [0, 0, 0, 1, 1, 2], [0], [0]>} : vector<2x8x8xbf16>, vector<2x8x8xbf16>, vector<2x8x8xf32> -> vector<2x8x8xf32>
    "tpu.trace_stop"() : () -> ()
    %106 = vector.shape_cast %105 : vector<2x8x8xf32> to vector<16x8xf32>
    %107 = arith.truncf %106 : vector<16x8xf32> to vector<16x8xbf16>
    %c2 = arith.constant 2 : index
    %c0_42 = arith.constant 0 : index
    %c0_43 = arith.constant 0 : index
    %108 = vector.load %arg9[%c2, %c0_42, %c0_43] : memref<4x8x32xbf16, #tpu.memory_space<vmem>>, vector<1x8x32xbf16>
    %109 = vector.shape_cast %108 : vector<1x8x32xbf16> to vector<8x32xbf16>
    %cst_44 = arith.constant dense<0.000000e+00> : vector<16x32xf32>
    %110 = tpu.matmul %107, %109, %cst_44 {dimension_numbers = #tpu.dot_dimension_numbers<[1], [0], [0], [1], [0, 0, 1, 1], [], []>} : vector<16x8xbf16>, vector<8x32xbf16>, vector<16x32xf32> -> vector<16x32xf32>
    %111 = arith.addf %84, %110 : vector<16x32xf32>
    %112 = arith.addf %85, %103 : vector<2x8x8xf32>
    %113 = vector.extract_strided_slice %22 {offsets = [0, 0, 24], sizes = [2, 8, 8], strides = [1, 1, 1]} : vector<2x8x32xbf16> to vector<2x8x8xbf16>
    %114 = vector.extract_strided_slice %24 {offsets = [0, 0, 24], sizes = [2, 8, 8], strides = [1, 1, 1]} : vector<2x8x32xbf16> to vector<2x8x8xbf16>
    %115 = vector.extract_strided_slice %26 {offsets = [0, 0, 24], sizes = [2, 8, 8], strides = [1, 1, 1]} : vector<2x8x32xbf16> to vector<2x8x8xbf16>
    "tpu.trace_start"() <{level = 10 : i32, message = "bqk,bnk->bqn"}> : () -> ()
    %cst_45 = arith.constant dense<0.000000e+00> : vector<2x8x8xf32>
    %116 = tpu.matmul %113, %114, %cst_45 {dimension_numbers = #tpu.dot_dimension_numbers<[2], [2], [1], [1], [0, 0, 0, 1, 1, 1], [0], [0]>} : vector<2x8x8xbf16>, vector<2x8x8xbf16>, vector<2x8x8xf32> -> vector<2x8x8xf32>
    %cst_46 = arith.constant -1.000000e+30 : f32
    "tpu.trace_stop"() : () -> ()
    %117 = vector.shape_cast %29 : vector<1x8x8xi1> to vector<1x8x8xi1>
    %118 = vector.broadcast %117 : vector<1x8x8xi1> to vector<2x8x8xi1>
    %119 = vector.broadcast %cst_46 : f32 to vector<2x8x8xf32>
    %120 = arith.select %118, %119, %116 : vector<2x8x8xi1>, vector<2x8x8xf32>
    %cst_47 = arith.constant dense<0xFF800000> : vector<2x8xf32>
    %121 = vector.multi_reduction <maximumf>, %120, %cst_47 [2] : vector<2x8x8xf32> to vector<2x8xf32>
    %122 = vector.shape_cast %121 : vector<2x8xf32> to vector<2x8x1xf32>
    %123 = vector.broadcast %122 : vector<2x8x1xf32> to vector<2x8x8xf32>
    %124 = arith.subf %120, %123 : vector<2x8x8xf32>
    %125 = math.exp %124 : vector<2x8x8xf32>
    %cst_48 = arith.constant dense<0.000000e+00> : vector<2x8xf32>
    %126 = vector.multi_reduction <add>, %125, %cst_48 [2] : vector<2x8x8xf32> to vector<2x8xf32>
    %127 = vector.shape_cast %126 : vector<2x8xf32> to vector<2x8x1xf32>
    %128 = tpu.reciprocal %127 {approx = true} : vector<2x8x1xf32> -> vector<2x8x1xf32>
    %129 = vector.broadcast %128 : vector<2x8x1xf32> to vector<2x8x8xf32>
    %130 = arith.mulf %125, %129 : vector<2x8x8xf32>
    %131 = arith.truncf %130 : vector<2x8x8xf32> to vector<2x8x8xbf16>
    "tpu.trace_start"() <{level = 10 : i32, message = "bqn,bnk->bqk"}> : () -> ()
    %cst_49 = arith.constant dense<0.000000e+00> : vector<2x8x8xf32>
    %132 = tpu.matmul %131, %115, %cst_49 {dimension_numbers = #tpu.dot_dimension_numbers<[2], [1], [1], [2], [0, 0, 0, 1, 1, 2], [0], [0]>} : vector<2x8x8xbf16>, vector<2x8x8xbf16>, vector<2x8x8xf32> -> vector<2x8x8xf32>
    "tpu.trace_stop"() : () -> ()
    %133 = vector.shape_cast %132 : vector<2x8x8xf32> to vector<16x8xf32>
    %134 = arith.truncf %133 : vector<16x8xf32> to vector<16x8xbf16>
    %c3 = arith.constant 3 : index
    %c0_50 = arith.constant 0 : index
    %c0_51 = arith.constant 0 : index
    %135 = vector.load %arg9[%c3, %c0_50, %c0_51] : memref<4x8x32xbf16, #tpu.memory_space<vmem>>, vector<1x8x32xbf16>
    %136 = vector.shape_cast %135 : vector<1x8x32xbf16> to vector<8x32xbf16>
    %cst_52 = arith.constant dense<0.000000e+00> : vector<16x32xf32>
    %137 = tpu.matmul %134, %136, %cst_52 {dimension_numbers = #tpu.dot_dimension_numbers<[1], [0], [0], [1], [0, 0, 1, 1], [], []>} : vector<16x8xbf16>, vector<8x32xbf16>, vector<16x32xf32> -> vector<16x32xf32>
    %138 = arith.addf %111, %137 : vector<16x32xf32>
    %139 = arith.addf %112, %130 : vector<2x8x8xf32>
    %c0_53 = arith.constant 0 : index
    %c0_54 = arith.constant 0 : index
    %140 = vector.load %arg10[%c0_53, %c0_54] : memref<1x32xf32, #tpu.memory_space<vmem>>, vector<1x32xf32>
    %141 = vector.broadcast %140 : vector<1x32xf32> to vector<16x32xf32>
    %142 = arith.addf %138, %141 : vector<16x32xf32>
    %143 = arith.addf %142, %2 : vector<16x32xf32>
    %144 = arith.addf %143, %3 : vector<16x32xf32>
    %c0_55 = arith.constant 0 : index
    %c0_56 = arith.constant 0 : index
    %145 = vector.load %arg11[%c0_55, %c0_56] : memref<1x32xf32, #tpu.memory_space<vmem>>, vector<1x32xf32>
    %c0_57 = arith.constant 0 : index
    %c0_58 = arith.constant 0 : index
    %146 = vector.load %arg12[%c0_57, %c0_58] : memref<1x32xf32, #tpu.memory_space<vmem>>, vector<1x32xf32>
    %cst_59 = arith.constant dense<0.000000e+00> : vector<16xf32>
    %147 = vector.multi_reduction <add>, %144, %cst_59 [1] : vector<16x32xf32> to vector<16xf32>
    %148 = vector.shape_cast %147 : vector<16xf32> to vector<16x1xf32>
    %cst_60 = arith.constant 3.200000e+01 : f32
    %149 = vector.broadcast %cst_60 : f32 to vector<16x1xf32>
    %150 = arith.divf %148, %149 : vector<16x1xf32>
    %151 = vector.broadcast %150 : vector<16x1xf32> to vector<16x32xf32>
    %152 = arith.subf %144, %151 : vector<16x32xf32>
    %153 = arith.mulf %152, %152 : vector<16x32xf32>
    %cst_61 = arith.constant dense<0.000000e+00> : vector<16xf32>
    %154 = vector.multi_reduction <add>, %153, %cst_61 [1] : vector<16x32xf32> to vector<16xf32>
    %155 = vector.shape_cast %154 : vector<16xf32> to vector<16x1xf32>
    %cst_62 = arith.constant 3.200000e+01 : f32
    %156 = vector.broadcast %cst_62 : f32 to vector<16x1xf32>
    %157 = arith.divf %155, %156 : vector<16x1xf32>
    %158 = vector.broadcast %150 : vector<16x1xf32> to vector<16x32xf32>
    %159 = arith.subf %144, %158 : vector<16x32xf32>
    %cst_63 = arith.constant 9.99999974E-6 : f32
    %160 = vector.broadcast %cst_63 : f32 to vector<16x1xf32>
    %161 = arith.addf %157, %160 : vector<16x1xf32>
    %162 = math.rsqrt %161 : vector<16x1xf32>
    %163 = vector.broadcast %162 : vector<16x1xf32> to vector<16x32xf32>
    %164 = arith.mulf %159, %163 : vector<16x32xf32>
    %165 = vector.broadcast %145 : vector<1x32xf32> to vector<16x32xf32>
    %166 = arith.mulf %164, %165 : vector<16x32xf32>
    %167 = vector.broadcast %146 : vector<1x32xf32> to vector<16x32xf32>
    %168 = arith.addf %166, %167 : vector<16x32xf32>
    %169 = arith.truncf %168 : vector<16x32xf32> to vector<16x32xbf16>
    %c0_64 = arith.constant 0 : index
    %c0_65 = arith.constant 0 : index
    %170 = vector.load %arg13[%c0_64, %c0_65] : memref<32x32xbf16, #tpu.memory_space<vmem>>, vector<32x32xbf16>
    %cst_66 = arith.constant dense<0.000000e+00> : vector<16x32xf32>
    %171 = tpu.matmul %169, %170, %cst_66 {dimension_numbers = #tpu.dot_dimension_numbers<[1], [0], [0], [1], [0, 0, 1, 1], [], []>} : vector<16x32xbf16>, vector<32x32xbf16>, vector<16x32xf32> -> vector<16x32xf32>
    %c0_67 = arith.constant 0 : index
    %c0_68 = arith.constant 0 : index
    %172 = vector.load %arg14[%c0_67, %c0_68] : memref<1x32xf32, #tpu.memory_space<vmem>>, vector<1x32xf32>
    %173 = vector.broadcast %172 : vector<1x32xf32> to vector<16x32xf32>
    %174 = arith.addf %171, %173 : vector<16x32xf32>
    %cst_69 = arith.constant 0.000000e+00 : f32
    %175 = vector.broadcast %cst_69 : f32 to vector<16x32xf32>
    %176 = arith.maximumf %174, %175 : vector<16x32xf32>
    %177 = arith.truncf %176 : vector<16x32xf32> to vector<16x32xbf16>
    %c0_70 = arith.constant 0 : index
    %c0_71 = arith.constant 0 : index
    %178 = vector.load %arg15[%c0_70, %c0_71] : memref<32x32xbf16, #tpu.memory_space<vmem>>, vector<32x32xbf16>
    %cst_72 = arith.constant dense<0.000000e+00> : vector<16x32xf32>
    %179 = tpu.matmul %177, %178, %cst_72 {dimension_numbers = #tpu.dot_dimension_numbers<[1], [0], [0], [1], [0, 0, 1, 1], [], []>} : vector<16x32xbf16>, vector<32x32xbf16>, vector<16x32xf32> -> vector<16x32xf32>
    %c0_73 = arith.constant 0 : index
    %c0_74 = arith.constant 0 : index
    %180 = vector.load %arg16[%c0_73, %c0_74] : memref<1x32xf32, #tpu.memory_space<vmem>>, vector<1x32xf32>
    %181 = vector.broadcast %180 : vector<1x32xf32> to vector<16x32xf32>
    %182 = arith.addf %179, %181 : vector<16x32xf32>
    %183 = arith.addf %182, %168 : vector<16x32xf32>
    %c0_75 = arith.constant 0 : index
    %c0_76 = arith.constant 0 : index
    %184 = vector.load %arg17[%c0_75, %c0_76] : memref<1x32xf32, #tpu.memory_space<vmem>>, vector<1x32xf32>
    %c0_77 = arith.constant 0 : index
    %c0_78 = arith.constant 0 : index
    %185 = vector.load %arg18[%c0_77, %c0_78] : memref<1x32xf32, #tpu.memory_space<vmem>>, vector<1x32xf32>
    %cst_79 = arith.constant dense<0.000000e+00> : vector<16xf32>
    %186 = vector.multi_reduction <add>, %183, %cst_79 [1] : vector<16x32xf32> to vector<16xf32>
    %187 = vector.shape_cast %186 : vector<16xf32> to vector<16x1xf32>
    %cst_80 = arith.constant 3.200000e+01 : f32
    %188 = vector.broadcast %cst_80 : f32 to vector<16x1xf32>
    %189 = arith.divf %187, %188 : vector<16x1xf32>
    %190 = vector.broadcast %189 : vector<16x1xf32> to vector<16x32xf32>
    %191 = arith.subf %183, %190 : vector<16x32xf32>
    %192 = arith.mulf %191, %191 : vector<16x32xf32>
    %cst_81 = arith.constant dense<0.000000e+00> : vector<16xf32>
    %193 = vector.multi_reduction <add>, %192, %cst_81 [1] : vector<16x32xf32> to vector<16xf32>
    %194 = vector.shape_cast %193 : vector<16xf32> to vector<16x1xf32>
    %cst_82 = arith.constant 3.200000e+01 : f32
    %195 = vector.broadcast %cst_82 : f32 to vector<16x1xf32>
    %196 = arith.divf %194, %195 : vector<16x1xf32>
    %197 = vector.broadcast %189 : vector<16x1xf32> to vector<16x32xf32>
    %198 = arith.subf %183, %197 : vector<16x32xf32>
    %cst_83 = arith.constant 9.99999974E-6 : f32
    %199 = vector.broadcast %cst_83 : f32 to vector<16x1xf32>
    %200 = arith.addf %196, %199 : vector<16x1xf32>
    %201 = math.rsqrt %200 : vector<16x1xf32>
    %202 = vector.broadcast %201 : vector<16x1xf32> to vector<16x32xf32>
    %203 = arith.mulf %198, %202 : vector<16x32xf32>
    %204 = vector.broadcast %184 : vector<1x32xf32> to vector<16x32xf32>
    %205 = arith.mulf %203, %204 : vector<16x32xf32>
    %206 = vector.broadcast %185 : vector<1x32xf32> to vector<16x32xf32>
    %207 = arith.addf %205, %206 : vector<16x32xf32>
    %c0_84 = arith.constant 0 : index
    %c0_85 = arith.constant 0 : index
    %208 = vector.load %arg19[%c0_84, %c0_85] : memref<1x32xf32, #tpu.memory_space<vmem>>, vector<1x32xf32>
    %cst_86 = arith.constant dense<0.000000e+00> : vector<1x16xf32>
    %209 = tpu.matmul %208, %207, %cst_86 {dimension_numbers = #tpu.dot_dimension_numbers<[1], [1], [0], [0], [0, 0, 1, 0], [], []>} : vector<1x32xf32>, vector<16x32xf32>, vector<1x16xf32> -> vector<1x16xf32>
    %c0_87 = arith.constant 0 : index
    %c0_88 = arith.constant 0 : index
    %210 = memref.load %arg20[%c0_87, %c0_88] : memref<1x1xf32, #tpu.memory_space<smem>>
    %211 = vector.broadcast %210 : f32 to vector<1x16xf32>
    %212 = arith.addf %209, %211 : vector<1x16xf32>
    %213 = arith.negf %212 : vector<1x16xf32>
    %214 = math.exp %213 : vector<1x16xf32>
    %cst_89 = arith.constant 1.000000e+00 : f32
    %215 = vector.broadcast %cst_89 : f32 to vector<1x16xf32>
    %216 = arith.addf %215, %214 : vector<1x16xf32>
    %217 = arith.divf %215, %216 : vector<1x16xf32>
    %c0_90 = arith.constant 0 : index
    %c0_91 = arith.constant 0 : index
    %c0_92 = arith.constant 0 : index
    %218 = vector.load %arg21[%c0_90, %c0_91, %c0_92] : memref<1x1x16xf32, #tpu.memory_space<vmem>>, vector<1x1x16xf32>
    %219 = vector.shape_cast %218 : vector<1x1x16xf32> to vector<1x16xf32>
    %220 = vector.shape_cast %217 : vector<1x16xf32> to vector<1x1x16xf32>
    tpu.vector_store %arg21[%c0_90, %c0_91, %c0_92], %220 {strides = array<i32>} : memref<1x1x16xf32, #tpu.memory_space<vmem>>, vector<1x1x16xf32>,
    %cst_93 = arith.constant 2.500000e-01 : f32
    %221 = vector.broadcast %cst_93 : f32 to vector<2x8x8xf32>
    %222 = arith.mulf %139, %221 : vector<2x8x8xf32>
    %c0_94 = arith.constant 0 : index
    %c0_95 = arith.constant 0 : index
    %c0_96 = arith.constant 0 : index
    %223 = vector.load %arg22[%c0_94, %c0_95, %c0_96] : memref<2x8x8xf32, #tpu.memory_space<vmem>>, vector<2x8x8xf32>
    tpu.vector_store %arg22[%c0_94, %c0_95, %c0_96], %222 {strides = array<i32>} : memref<2x8x8xf32, #tpu.memory_space<vmem>>, vector<2x8x8xf32>,
    return
  }
  func.func @transform_0(%arg0: i32) -> (i32, i32) {
    %c0_i32 = arith.constant 0 : i32
    %c0_i32_0 = arith.constant 0 : i32
    return %arg0, %c0_i32 : i32, i32
  }
  func.func @transform_1(%arg0: i32) -> (i32, i32) {
    %c0_i32 = arith.constant 0 : i32
    %c0_i32_0 = arith.constant 0 : i32
    return %arg0, %c0_i32 : i32, i32
  }
  func.func @transform_2(%arg0: i32) -> (i32, i32) {
    %c0_i32 = arith.constant 0 : i32
    %c0_i32_0 = arith.constant 0 : i32
    %c0_i32_1 = arith.constant 0 : i32
    return %c0_i32, %c0_i32_0 : i32, i32
  }
  func.func @transform_3(%arg0: i32) -> (i32, i32) {
    %c0_i32 = arith.constant 0 : i32
    %c0_i32_0 = arith.constant 0 : i32
    %c0_i32_1 = arith.constant 0 : i32
    return %c0_i32, %c0_i32_0 : i32, i32
  }
  func.func @transform_4(%arg0: i32) -> (i32, i32) {
    %c0_i32 = arith.constant 0 : i32
    %c0_i32_0 = arith.constant 0 : i32
    %c0_i32_1 = arith.constant 0 : i32
    return %c0_i32, %c0_i32_0 : i32, i32
  }
  func.func @transform_5(%arg0: i32) -> (i32, i32) {
    %c0_i32 = arith.constant 0 : i32
    %c0_i32_0 = arith.constant 0 : i32
    %c0_i32_1 = arith.constant 0 : i32
    return %c0_i32, %c0_i32_0 : i32, i32
  }
  func.func @transform_6(%arg0: i32) -> (i32, i32) {
    %c0_i32 = arith.constant 0 : i32
    %c0_i32_0 = arith.constant 0 : i32
    %c0_i32_1 = arith.constant 0 : i32
    return %c0_i32, %c0_i32_0 : i32, i32
  }
  func.func @transform_7(%arg0: i32) -> (i32, i32) {
    %c0_i32 = arith.constant 0 : i32
    %c0_i32_0 = arith.constant 0 : i32
    %c0_i32_1 = arith.constant 0 : i32
    return %c0_i32, %c0_i32_0 : i32, i32
  }
  func.func @transform_8(%arg0: i32) -> (i32, i32, i32) {
    %c0_i32 = arith.constant 0 : i32
    %c0_i32_0 = arith.constant 0 : i32
    %c0_i32_1 = arith.constant 0 : i32
    %c0_i32_2 = arith.constant 0 : i32
    return %c0_i32, %c0_i32_0, %c0_i32_1 : i32, i32, i32
  }
  func.func @transform_9(%arg0: i32) -> (i32, i32) {
    %c0_i32 = arith.constant 0 : i32
    %c0_i32_0 = arith.constant 0 : i32
    %c0_i32_1 = arith.constant 0 : i32
    return %c0_i32, %c0_i32_0 : i32, i32
  }
  func.func @transform_10(%arg0: i32) -> (i32, i32) {
    %c0_i32 = arith.constant 0 : i32
    %c0_i32_0 = arith.constant 0 : i32
    %c0_i32_1 = arith.constant 0 : i32
    return %c0_i32, %c0_i32_0 : i32, i32
  }
  func.func @transform_11(%arg0: i32) -> (i32, i32) {
    %c0_i32 = arith.constant 0 : i32
    %c0_i32_0 = arith.constant 0 : i32
    %c0_i32_1 = arith.constant 0 : i32
    return %c0_i32, %c0_i32_0 : i32, i32
  }
  func.func @transform_12(%arg0: i32) -> (i32, i32) {
    %c0_i32 = arith.constant 0 : i32
    %c0_i32_0 = arith.constant 0 : i32
    %c0_i32_1 = arith.constant 0 : i32
    return %c0_i32, %c0_i32_0 : i32, i32
  }
  func.func @transform_13(%arg0: i32) -> (i32, i32) {
    %c0_i32 = arith.constant 0 : i32
    %c0_i32_0 = arith.constant 0 : i32
    %c0_i32_1 = arith.constant 0 : i32
    return %c0_i32, %c0_i32_0 : i32, i32
  }
  func.func @transform_14(%arg0: i32) -> (i32, i32) {
    %c0_i32 = arith.constant 0 : i32
    %c0_i32_0 = arith.constant 0 : i32
    %c0_i32_1 = arith.constant 0 : i32
    return %c0_i32, %c0_i32_0 : i32, i32
  }
  func.func @transform_15(%arg0: i32) -> (i32, i32) {
    %c0_i32 = arith.constant 0 : i32
    %c0_i32_0 = arith.constant 0 : i32
    %c0_i32_1 = arith.constant 0 : i32
    return %c0_i32, %c0_i32_0 : i32, i32
  }
  func.func @transform_16(%arg0: i32) -> (i32, i32) {
    %c0_i32 = arith.constant 0 : i32
    %c0_i32_0 = arith.constant 0 : i32
    %c0_i32_1 = arith.constant 0 : i32
    return %c0_i32, %c0_i32_0 : i32, i32
  }
  func.func @transform_17(%arg0: i32) -> (i32, i32) {
    %c0_i32 = arith.constant 0 : i32
    %c0_i32_0 = arith.constant 0 : i32
    %c0_i32_1 = arith.constant 0 : i32
    return %c0_i32, %c0_i32_0 : i32, i32
  }
  func.func @transform_18(%arg0: i32) -> (i32, i32) {
    %c0_i32 = arith.constant 0 : i32
    %c0_i32_0 = arith.constant 0 : i32
    %c0_i32_1 = arith.constant 0 : i32
    return %c0_i32, %c0_i32_0 : i32, i32
  }
  func.func @transform_19(%arg0: i32) -> (i32, i32) {
    %c0_i32 = arith.constant 0 : i32
    %c0_i32_0 = arith.constant 0 : i32
    %c0_i32_1 = arith.constant 0 : i32
    return %c0_i32, %c0_i32_0 : i32, i32
  }
  func.func @transform_20(%arg0: i32) -> (i32, i32, i32) {
    %c0_i32 = arith.constant 0 : i32
    %c0_i32_0 = arith.constant 0 : i32
    %c0_i32_1 = arith.constant 0 : i32
    return %arg0, %c0_i32, %c0_i32_0 : i32, i32, i32
  }
  func.func @transform_21(%arg0: i32) -> (i32, i32, i32) {
    %c0_i32 = arith.constant 0 : i32
    %c0_i32_0 = arith.constant 0 : i32
    %c0_i32_1 = arith.constant 0 : i32
    return %arg0, %c0_i32, %c0_i32_0 : i32, i32, i32
  }
}

</mosaic_0001>

<bundles_post_ra>
// kernel: tpu_custom_call.1
= control target key start
LH: loop header
LB: loop body
LE: loop exit
PB: predicated region body
PF: predicated region fallthrough
CT: control target
= control target key end

     0   :  { %s4460_s0 = inlined_call_operand.hbm [shape: bf16[32,32], index: 0, kind: input, shape index: {}]   ;;  %s4461_s1 = inlined_call_operand.hbm [shape: bf16[32,32], index: 1, kind: input, shape index: {}]   ;;  %s4462_s2 = inlined_call_operand.hbm [shape: bf16[32,32], index: 2, kind: input, shape index: {}]   ;;  %s4463_s3 = inlined_call_operand.hbm [shape: f32[1,32], index: 3, kind: input, shape index: {}]   ;;  %s4464_s4 = inlined_call_operand.hbm [shape: bf16[32,32], index: 4, kind: input, shape index: {}]   ;;  %s4465_s5 = inlined_call_operand.hbm [shape: f32[1,32], index: 5, kind: input, shape index: {}]   ;;  %s4466_s6 = inlined_call_operand.hbm [shape: bf16[32,32], index: 6, kind: input, shape index: {}]   ;;  %s4467_s7 = inlined_call_operand.hbm [shape: f32[1,32], index: 7, kind: input, shape index: {}]   ;;  %s4468_s8 = inlined_call_operand.vmem [shape: bf16[4,8,32], index: 8, kind: input, shape index: {}]   ;;  %s4469_s9 = inlined_call_operand.vmem [shape: f32[1,32], index: 9, kind: input, shape index: {}]   ;;  %s4470_s10 = inlined_call_operand.vmem [shape: f32[1,32], index: 10, kind: input, shape index: {}]   ;;  %s4471_s11 = inlined_call_operand.vmem [shape: f32[1,32], index: 11, kind: input, shape index: {}]   ;;  %s4472_s12 = inlined_call_operand.hbm [shape: bf16[32,32], index: 12, kind: input, shape index: {}]   ;;  %s4473_s13 = inlined_call_operand.vmem [shape: f32[1,32], index: 13, kind: input, shape index: {}]   ;;  %s4474_s14 = inlined_call_operand.hbm [shape: bf16[32,32], index: 14, kind: input, shape index: {}]   ;;  %s4475_s15 = inlined_call_operand.vmem [shape: f32[1,32], index: 15, kind: input, shape index: {}]   ;;  %s4476_s16 = inlined_call_operand.vmem [shape: f32[1,32], index: 16, kind: input, shape index: {}]   ;;  %s4477_s17 = inlined_call_operand.vmem [shape: f32[1,32], index: 17, kind: input, shape index: {}]   ;;  %s4478_s18 = inlined_call_operand.vmem [shape: f32[1,32], index: 18, kind: input, shape index: {}]   ;;  %s4479_s19 = inlined_call_operand.<no memory space> [shape: f32[1,1], index: 19, kind: input, shape index: {}]   ;;  %s4480_s20 = inlined_call_operand.hbm [shape: f32[2,1,16], index: 20, kind: output, shape index: {0}]   ;;  %s4481_s21 = inlined_call_operand.hbm [shape: f32[4,8,8], index: 21, kind: output, shape index: {1}]  }
   0x1   :  { %4497 = sst [smem:[#allocation35_spill]] %s4460_s0 }
   0x2   :  { %4498 = sst [smem:[#allocation36_spill]] %s4461_s1 }
   0x3   :  { %4499 = sst [smem:[#allocation37_spill]] %s4462_s2 }
   0x4   :  { %4500 = sst [smem:[#allocation38_spill]] %s4463_s3 }
   0x5   :  { %4501 = sst [smem:[#allocation39_spill]] %s4464_s4 }
   0x6   :  { %4502 = sst [smem:[#allocation40_spill]] %s4465_s5 }
   0x7   :  { %4503 = sst [smem:[#allocation41_spill]] %s4466_s6 }
   0x8   :  { %4504 = sst [smem:[#allocation42_spill]] %s4467_s7 }
   0x9   :  { %4505 = sst [smem:[#allocation43_spill]] %s4472_s12 }
   0xa   :  { %4506 = sst [smem:[#allocation44_spill]] %s4474_s14 }
   0xb   :  { %4507 = sst [smem:[#allocation45_spill]] %s4476_s16 }
   0xc   :  { %4508 = sst [smem:[#allocation46_spill]] %s4477_s17 }
   0xd   :  { %4509 = sst [smem:[#allocation47_spill]] %s4478_s18 }
   0xe   :  { %4510 = sst [smem:[#allocation48_spill]] %s4480_s20 }
   0xf   :  { %4511 = sst [smem:[#allocation49_spill]] %s4481_s21 }
  0x10   :  { %27 = sst [smem:[#allocation2]] %s4479_s19 }
  0x11   :  { %28 = vsyncpa [#allocation4], 0 }
  0x12   :  { %30 = vsyncpa [#allocation4 + $0x1], 0 }
  0x13   :  { %31 = vsyncpa [#allocation7], 0 }
  0x14   :  { %33 = vsyncpa [#allocation7 + $0x1], 0 }
  0x15   :  { %34 = vsyncpa [#allocation10], 0 }
  0x16   :  { %35 = vsyncpa [#allocation13], 0 }
  0x17   :  { %36 = vsyncpa [#allocation16], 0 }
  0x18   :  { %37 = vsyncpa [#allocation19], 0 }
  0x19   :  { %38 = vsyncpa [#allocation5], 0 }
  0x1a   :  { %40 = vsyncpa [#allocation5 + $0x1], 0 }
  0x1b   :  { %41 = vsyncpa [#allocation22], 0 }
  0x1c   :  { %43 = vsyncpa [#allocation22 + $0x1], 0  ;;  %s3773_s26 = smov 0   ;;  %s3775_s27 = smov 0  }
  0x1d   :  { %s3777_s3 = smov 0   ;;  %s3779_s28 = smov 0  }
  0x1e LB: > { %4512 = sst [smem:[#allocation32_spill]] %s3633_s3  ;;  %s3639_s19 = smov [#allocation8]   ;;  %s3637_s28 = sphi %s3779_s28, %s4557_s28   ;;  %s3633_s3 = sphi %s3777_s3, %s4559_s3   ;;  %s3629_s27 = sphi %s3775_s27, %s4561_s27   ;;  %s3625_s26 = sphi %s3773_s26, %s4560_s26  }
  0x1f   : > { %s548_s29 = sshll.u32 %s3639_s19, 4  ;;  %s3794_s0 = sadd.s32 4294967295, %s3637_s28   ;;  %s549_s29 = int_to_ptr.vmem [resolvable:$true] %s548_s29 }
  0x20   : > { %p2735_p0 = scmp.ge.s32.totalorder %s3637_s28, 1  ;;  %p4486_p1 = scmp.eq.s32.totalorder %s3794_s0, 0 }
  0x21   : > { %p536_p2 = scmp.lt.s32.totalorder %s3637_s28, 3  ;;  %s3640_s30 = smov [#allocation9]  }
  0x22   : > { %s562_s5 = sshll.u32 %s3640_s30, 4  ;;  %s3641_s23 = smov [#allocation12]   ;;  %s563_s5 = int_to_ptr.vmem [resolvable:$true] %s562_s5 }
  0x23   : > { %p3799_p3 = pnand %p2735_p0, %p536_p2  ;;  %s586_s1 = sshll.u32 %s3641_s23, 4  ;;  %s3812_s1 = int_to_ptr.vmem [resolvable:$true] %s586_s1 }
  0x24   : > { %s3266_s2 = scalar_lea.vmem %s549_s29, 256  ;;  %p3274_p11 = scmp.lt.s32.totalorder %s549_s29, %s549_s29 }
  0x25   : > { %s4513_s4 = scalar_select %p3799_p3, 1, 0 }
  0x26   : > { %p3091_p5 = pneg %p3799_p3  ;;  %p3267_p8 = scmp.ne.s32.totalorder %s549_s29, %s3266_s2 }
  0x27   : > { %p3275_p12 = scmp.lt.s32.totalorder %s3266_s2, %s3266_s2 }
  0x28   : > { %p3808_p6 = pnand %p3091_p5, %p4486_p1 }
  0x29   : > { %p3276_p13 = por %p3275_p12, %p3274_p11 }
  0x2a   : > { %p3816_p7 = pneg %p3808_p6 }
  0x2c   : > { %p3269_p9 = pnand %p3267_p8, %p3816_p7 }
  0x2e   : > { %p3270_p10 = pneg %p3269_p9 }
  0x30   : > { %p3277_p0 = pnand %p3276_p13, %p3270_p10 }
  0x32   : > { %3280 = shalt.err (!%p3277_p0)
}
  0x33   : > { %s4488_s25 = smov 64   ;;  %s4490_s19 = smov 4  }
  0x34   : > { %s4516_s20 = sld [smem:[#allocation37_spill]]  ;;  %s3292_s21 = scalar_lea.vmem %s563_s5, 16 }
  0x35   : > { %p3293_p2 = scmp.ne.s32.totalorder %s563_s5, %s3292_s21  ;;  %s3299_s2 = scalar_lea.vmem %s563_s5, 32 }
  0x36   : > { %p3300_p9 = scmp.lt.s32.totalorder %s563_s5, %s563_s5  ;;  %p3301_p10 = scmp.lt.s32.totalorder %s3299_s2, %s3292_s21 }
  0x37   : > { %p3295_p5 = pnand %p3293_p2, %p3816_p7 }
  0x38   : > { %p3302_p11 = por %p3301_p10, %p3300_p9 }
  0x39   : > { %p3296_p8 = pneg %p3295_p5 }
  0x3a   : > { %3094 = dma.hbm_to_vmem [thread:$0]  (!%p3808_p6), %s4516_s20, 256, %s549_s29, [#allocation7], %s4488_s25, %s4488_s25, %s4490_s19  }
  0x3b   : > { %p3303_p12 = pnand %p3302_p11, %p3296_p8 }
  0x3d   : > { %3306 = shalt.err (!%p3303_p12)
}
  0x3e   : > { %s4517_s16 = sld [smem:[#allocation38_spill]]  ;;  %s3318_s20 = scalar_lea.vmem %s3812_s1, 16 }
  0x3f   : > { %p3319_p13 = scmp.ne.s32.totalorder %s3812_s1, %s3318_s20  ;;  %s3325_s21 = scalar_lea.vmem %s3812_s1, 32 }
  0x40   : > { %p3326_p5 = scmp.lt.s32.totalorder %s3812_s1, %s3812_s1  ;;  %p3327_p8 = scmp.lt.s32.totalorder %s3325_s21, %s3318_s20 }
  0x41   : > { %p3321_p0 = pnand %p3319_p13, %p3816_p7 }
  0x42   : > { %p3328_p9 = por %p3327_p8, %p3326_p5 }
  0x43   : > { %p3322_p2 = pneg %p3321_p0 }
  0x44   : > { %3097 = dma.hbm_to_vmem [thread:$0]  (!%p3808_p6), %s4517_s16, 16, %s563_s5, [#allocation10]  }
  0x45   : > { %p3329_p10 = pnand %p3328_p9, %p3322_p2 }
  0x47   : > { %3332 = shalt.err (!%p3329_p10)
}
  0x48   : > { %s4518_s29 = sld [smem:[#allocation40_spill]]  ;;  %s3644_s16 = smov [#allocation15]  }
  0x49   : > { %s610_s5 = sshll.u32 %s3644_s16, 4  ;;  %s3645_s30 = smov [#allocation11]   ;;  %s611_s5 = int_to_ptr.vmem [resolvable:$true] %s610_s5 }
  0x4a   : > { %s572_s23 = sshll.u32 %s3645_s30, 4  ;;  %s3344_s2 = scalar_lea.vmem %s611_s5, 16  ;;  %s573_s23 = int_to_ptr.vmem [resolvable:$true] %s572_s23 }
  0x4b   : > { %p3345_p11 = scmp.ne.s32.totalorder %s611_s5, %s3344_s2  ;;  %s3351_s20 = scalar_lea.vmem %s611_s5, 32 }
  0x4c   : > { %p3352_p0 = scmp.lt.s32.totalorder %s611_s5, %s611_s5  ;;  %p3353_p2 = scmp.lt.s32.totalorder %s3351_s20, %s3344_s2 }
  0x4d   : > { %p3347_p12 = pnand %p3345_p11, %p3816_p7 }
  0x4e   : > { %3103 = dma.hbm_to_vmem [thread:$0]  (!%p3808_p6), %s4518_s29, 16, %s3812_s1, [#allocation13]  }
  0x4f   : > { %p3348_p13 = pneg %p3347_p12  ;;  %p3354_p5 = por %p3353_p2, %p3352_p0 }
  0x51   : > { %p3355_p8 = pnand %p3354_p5, %p3348_p13 }
  0x53   : > { %3358 = shalt.err (!%p3355_p8)
}
  0x54   : > { %s4519_s7 = sld [smem:[#allocation42_spill]]  ;;  %s3370_s17 = scalar_lea.vmem %s573_s23, 256 }
  0x55   : > { %p3371_p9 = scmp.ne.s32.totalorder %s573_s23, %s3370_s17  ;;  %p3378_p12 = scmp.lt.s32.totalorder %s573_s23, %s573_s23 }
  0x56   : > { %p3379_p4 = scmp.lt.s32.totalorder %s3370_s17, %s3370_s17 }
  0x57   : > { %p3373_p10 = pnand %p3371_p9, %p3816_p7 }
  0x58   : > { %p3380_p1 = por %p3379_p4, %p3378_p12 }
  0x59   : > { %p3374_p11 = pneg %p3373_p10 }
  0x5a   : > { %3109 = dma.hbm_to_vmem [thread:$0]  (!%p3808_p6), %s4519_s7, 16, %s611_s5, [#allocation16]  }
  0x5b   : > { %p3381_p3 = pnand %p3380_p1, %p3374_p11 }
  0x5d   : > { %3384 = shalt.err (!%p3381_p3)
}
  0x5e   : > { %s4520_s16 = sld [smem:[#allocation39_spill]]  ;;  %s3646_s5 = smov [#allocation14]  }
  0x5f   : > { %s596_s30 = sshll.u32 %s3646_s5, 4  ;;  %s3647_s2 = smov [#allocation17]   ;;  %s597_s30 = int_to_ptr.vmem [resolvable:$true] %s596_s30 }
  0x60   : > { %s632_s20 = sshll.u32 %s3647_s2, 4  ;;  %s3396_s21 = scalar_lea.vmem %s597_s30, 256  ;;  %s633_s20 = int_to_ptr.vmem [resolvable:$true] %s632_s20 }
  0x61   : > { %p3397_p13 = scmp.ne.s32.totalorder %s597_s30, %s3396_s21  ;;  %p3404_p4 = scmp.lt.s32.totalorder %s597_s30, %s597_s30 }
  0x62   : > { %p3405_p0 = scmp.lt.s32.totalorder %s3396_s21, %s3396_s21 }
  0x63   : > { %p3399_p1 = pnand %p3397_p13, %p3816_p7 }
  0x64   : > { %3100 = dma.hbm_to_vmem [thread:$0]  (!%p3808_p6), %s4520_s16, 256, %s573_s23, [#allocation10], %s4488_s25, %s4488_s25, %s4490_s19  }
  0x65   : > { %p3400_p3 = pneg %p3399_p1  ;;  %p3406_p2 = por %p3405_p0, %p3404_p4 }
  0x67   : > { %p3407_p5 = pnand %p3406_p2, %p3400_p3 }
  0x69   : > { %3410 = shalt.err (!%p3407_p5)
}
  0x6a   : > { %s4521_s6 = sld [smem:[#allocation41_spill]]  ;;  %s3422_s17 = scalar_lea.vmem %s633_s20, 256 }
  0x6b   : > { %p3423_p8 = scmp.ne.s32.totalorder %s633_s20, %s3422_s17  ;;  %p3430_p11 = scmp.lt.s32.totalorder %s633_s20, %s633_s20 }
  0x6c   : > { %p3431_p12 = scmp.lt.s32.totalorder %s3422_s17, %s3422_s17 }
  0x6d   : > { %p3425_p9 = pnand %p3423_p8, %p3816_p7 }
  0x6e   : > { %p3432_p13 = por %p3431_p12, %p3430_p11 }
  0x6f   : > { %p3426_p10 = pneg %p3425_p9 }
  0x70   : > { %3106 = dma.hbm_to_vmem [thread:$0]  (!%p3808_p6), %s4521_s6, 256, %s597_s30, [#allocation13], %s4488_s25, %s4488_s25, %s4490_s19  }
  0x71   : > { %p3433_p1 = pnand %p3432_p13, %p3426_p10 }
  0x73   : > { %3436 = shalt.err (!%p3433_p1)
}
  0x74   : > { %s4522_s12 = sld [smem:[#allocation43_spill]]  ;;  %s3648_s16 = smov [#allocation18]  }
  0x75   : > { %s648_s5 = sshll.u32 %s3648_s16, 4  ;;  %s649_s5 = int_to_ptr.vmem [resolvable:$true] %s648_s5 }
  0x76   : > { %s3448_s30 = scalar_lea.vmem %s649_s5, 256  ;;  %p3456_p2 = scmp.lt.s32.totalorder %s649_s5, %s649_s5 }
  0x77   : > { %p3449_p3 = scmp.ne.s32.totalorder %s649_s5, %s3448_s30  ;;  %p3457_p5 = scmp.lt.s32.totalorder %s3448_s30, %s3448_s30 }
  0x79   : > { %p3451_p4 = pnand %p3449_p3, %p3816_p7  ;;  %p3458_p8 = por %p3457_p5, %p3456_p2 }
  0x7a   : > { %3112 = dma.hbm_to_vmem [thread:$0]  (!%p3808_p6), %s4522_s12, 256, %s633_s20, [#allocation16], %s4488_s25, %s4488_s25, %s4490_s19  }
  0x7b   : > { %p3452_p0 = pneg %p3451_p4 }
  0x7d   : > { %p3459_p9 = pnand %p3458_p8, %p3452_p0 }
  0x7f   : > { %3462 = shalt.err (!%p3459_p9)
}
  0x80   : > { %s4523_s14 = sld [smem:[#allocation44_spill]]  ;;  %s2734_s22 = sadd.s32 4294967294, %s3637_s28  }
  0x81   : > { %s3899_s24 = sadd.s32 1, %s3637_s28   ;;  %s56_s23 = sadd.s32 1, %s3633_s3 }
  0x82   : > { %4524 = sst [smem:[#allocation33_spill]] %s3899_s24  ;;  %s53_s21 = ssub.s32 %s3637_s28, %s3899_s24 }
  0x83   : > { %p54_p7 = scmp.eq.s32.totalorder %s53_s21, 0  ;;  %p63_p10 = scmp.ne.s32.totalorder %s3633_s3, %s3629_s27 }
  0x84   : > { %p64_p11 = scmp.eq.s32.totalorder %s3637_s28, 0  ;;  %p69_p12 = scmp.ne.s32.totalorder %s3629_s27, %s3625_s26 }
  0x85   : > { %s3910_s1 = scalar_select %p54_p7, %s3633_s3, %s56_s23  }
  0x86   : > { %3115 = dma.hbm_to_vmem [thread:$0]  (!%p3808_p6), %s4523_s14, 256, %s649_s5, [#allocation19], %s4488_s25, %s4488_s25, %s4490_s19  }
  0x87   : > { %4525 = sst [smem:[#allocation34_spill]] %s3910_s1  ;;  %p3912_p13 = por %p64_p11, %p63_p10 }
  0x88   : > { %p4527_p1 = scmp.eq.s32.totalorder %s3794_s0, 0  ;;  %p497_p3 = scmp.eq.s32.totalorder %s3794_s0, 1 }
  0x89   : > { %p503_p4 = scmp.eq.s32.totalorder %s2734_s22, 1  ;;  %p3138_p0 = scmp.lt.s32.totalorder %s3637_s28, 2 }
  0x8a   : > { %p3918_p6 = por %p4527_p1, %p69_p12  ;;  %s677_s29 = sand.u32 1, %s3633_s3  }
  0x8b   : > { %p3925_p2 = por %p497_p3, %p63_p10  ;;  %p3929_p5 = por %p503_p4, %p69_p12 }
  0x8c   : > { %s2745_s30 = sshll.u32 %s677_s29, 3  ;;  %s2823_s2 = sshll.u32 %s3637_s28, 7 }
  0x8d   : > { %s4529_s16 = scalar_select %p3925_p2, 1, 0 }
  0x8e   : > { %s4530_s5 = scalar_select %p3929_p5, 1, 0 }
  0x8f   : > { %s4531_s23 = sld [smem:[#allocation35_spill]]  ;;  %s681_s22 = scalar_lea.vmem [#allocation3], %s2745_s30 }
  0x90   : > { %s688_s19 = sshll.u32 %s681_s22, 4  ;;  %p3943_p8 = pnand %p3138_p0, %p3912_p13  ;;  %s3939_s19 = int_to_ptr.vmem [resolvable:$true] %s688_s19 }
  0x91   : > { %s4533_s14 = sld [smem:[#allocation36_spill]]  ;;  %s702_s21 = scalar_lea.vmem [#allocation6], %s2745_s30 }
  0x92   : > { %s3952_s1 = sshll.u32 %s702_s21, 4  ;;  %s3954_s3 = scalar_lea.sflag [#allocation4], %s677_s29  ;;  %s3985_s1 = int_to_ptr.vmem [resolvable:$true] %s3952_s1 }
  0x93   : > { %p3465_p7 = pneg %p3943_p8 }
  0x95   : > { %s3937_s25 = scalar_lea.hbm %s4531_s23, %s2823_s2  ;;  %s3468_s7 = scalar_lea.hbm %s4531_s23, 256 }
  0x96   : > { %s3463_s22 = scalar_lea.hbm %s3937_s25, 128  ;;  %p3469_p12 = scmp.lt.s32.totalorder %s3937_s25, %s4531_s23 }
  0x97   : > { %s3950_s20 = scalar_lea.hbm %s4533_s14, %s2823_s2  ;;  %p3464_p9 = scmp.ne.s32.totalorder %s3937_s25, %s3463_s22 }
  0x98   : > { %p3470_p13 = scmp.lt.s32.totalorder %s3468_s7, %s3463_s22 }
  0x99   : > { %p3466_p10 = pnand %p3465_p7, %p3464_p9 }
  0x9a   : > { %p3471_p1 = por %p3470_p13, %p3469_p12 }
  0x9b   : > { %p3467_p11 = pneg %p3466_p10 }
  0x9d   : > { %p3472_p3 = pnand %p3471_p1, %p3467_p11 }
  0x9f   : > { %3475 = shalt.err (!%p3472_p3)
}
  0xa0   : > { %s3476_s29 = scalar_lea.vmem %s3939_s19, 128  ;;  %s3649_s24 = smov [#allocation3]  }
  0xa1   : > { %p3477_p4 = scmp.ne.s32.totalorder %s3939_s19, %s3476_s29  ;;  %s3481_s30 = sshll.u32 %s3649_s24, 4  ;;  %s3482_s30 = int_to_ptr.vmem [resolvable:$false] %s3481_s30 }
  0xa2   : > { %s3483_s21 = scalar_lea.vmem %s3482_s30, 256  ;;  %p3484_p10 = scmp.lt.s32.totalorder %s3939_s19, %s3482_s30 }
  0xa3   : > { %p3479_p0 = pnand %p3477_p4, %p3465_p7  ;;  %p3485_p5 = scmp.lt.s32.totalorder %s3483_s21, %s3476_s29 }
  0xa5   : > { %p3480_p9 = pneg %p3479_p0  ;;  %p3486_p2 = por %p3485_p5, %p3484_p10 }
  0xa7   : > { %p3487_p12 = pnand %p3486_p2, %p3480_p9 }
  0xa9   : > { %3490 = shalt.err (!%p3487_p12)
}
  0xaa   : > { %s4534_s22 = smov 4   ;;  %s4535_s17 = smov 64  }
  0xab   : > { %3119 = dma.hbm_to_vmem [thread:$0]  (!%p3943_p8), %s3937_s25, 128, %s3939_s19, %s3954_s3, %s4535_s17, %s4535_s17, %s4534_s22  }
  0xac   : > { %s698_s7 = sand.u32 1, %s3637_s28   ;;  %s3491_s2 = scalar_lea.hbm %s3950_s20, 128 }
  0xad   : > { %s699_s12 = scalar_lea.sflag [#allocation7], %s698_s7  ;;  %p3492_p2 = scmp.ne.s32.totalorder %s3950_s20, %s3491_s2 }
  0xae   : > { %s3496_s30 = scalar_lea.hbm %s4533_s14, 256  ;;  %p3497_p13 = scmp.lt.s32.totalorder %s3950_s20, %s4533_s14 }
  0xaf   : > { %p3494_p5 = pnand %p3492_p2, %p3465_p7  ;;  %p3498_p1 = scmp.lt.s32.totalorder %s3496_s30, %s3491_s2 }
  0xb1   : > { %p3495_p11 = pneg %p3494_p5  ;;  %p3499_p3 = por %p3498_p1, %p3497_p13 }
  0xb3   : > { %p3500_p4 = pnand %p3499_p3, %p3495_p11 }
  0xb5   : > { %3503 = shalt.err (!%p3500_p4)
}
  0xb6   : > { %s3504_s3 = scalar_lea.vmem %s3985_s1, 128  ;;  %s3650_s25 = smov [#allocation6]  }
  0xb7   : > { %p3505_p0 = scmp.ne.s32.totalorder %s3985_s1, %s3504_s3  ;;  %s3509_s19 = sshll.u32 %s3650_s25, 4  ;;  %s3510_s19 = int_to_ptr.vmem [resolvable:$false] %s3509_s19 }
  0xb8   : > { %s3511_s7 = scalar_lea.vmem %s3510_s19, 256  ;;  %p3512_p12 = scmp.lt.s32.totalorder %s3985_s1, %s3510_s19 }
  0xb9   : > { %p3507_p9 = pnand %p3505_p0, %p3465_p7  ;;  %p3513_p2 = scmp.lt.s32.totalorder %s3511_s7, %s3504_s3 }
  0xbb   : > { %p3508_p10 = pneg %p3507_p9  ;;  %p3514_p5 = por %p3513_p2, %p3512_p12 }
  0xbd   : > { %p3515_p13 = pnand %p3514_p5, %p3508_p10 }
  0xbf   : > { %3518 = shalt.err (!%p3515_p13)
}
  0xc0   : > { %3122 = dma.hbm_to_vmem [thread:$0]  (!%p3943_p8), %s3950_s20, 128, %s3985_s1, %s699_s12, %s4535_s17, %s4535_s17, %s4534_s22  }
  0xc1   : > { %p4536_p7 = scmp.ne.s32.totalorder %s4513_s4, 0 }
  0xc2   : > { %s4016_s23 = sand.u32 (!%p4536_p7), 1, %s3629_s27  }
  0xc3   : > { %721 = sbr.rel (%p4536_p7) target bundleno = 4554 (0x11ca), region = 100  ;;  %s2752_s2 = sshll.u32 (!%p4536_p7), %s4016_s23, 3 }
  0xc4   : > { %s724_s29 = scalar_lea.sflag (!%p4536_p7), [#allocation4], %s4016_s23  ;;  %s4020_s24 = scalar_lea.vmem (!%p4536_p7), [#allocation3], %s2752_s2 }
  0xc8   : > { %3588 = dma.done.wait (%p3918_p6), %s724_s29, 128  }
  0xc9   : > { %3590 = vsyncadd (%p3918_p6), %s724_s29, 4294967168  ;;  %s732_s6 = sand.u32 1, %s3794_s0   ;;  %s736_s1 = scalar_lea.vmem [#allocation6], %s2752_s2 }
  0xca   : > { %s733_s4 = scalar_lea.sflag [#allocation7], %s732_s6 }
  0xcb   : > { %3592 = dma.done.wait (%p3918_p6), %s733_s4, 128  }
  0xcc   : > { %3594 = vsyncadd (%p3918_p6), %s733_s4, 4294967168  ;;  %p4537_p8 = scmp.eq.s32.totalorder %s3794_s0, 0 }
  0xce   : > { %3596 = dma.done.wait (%p4537_p8), [#allocation7], 256   ;;  %p4538_p11 = pmov %p4537_p8 }
  0xcf   : > { %p4539_p1 = pmov %p4537_p8 }
  0xd0   : > { %3598 = vsyncadd (%p4538_p11), [#allocation7], 4294967040 }
  0xd1   : > { %3600 = dma.done.wait (%p4539_p1), [#allocation10], 272   ;;  %p4540_p3 = pmov %p4539_p1 }
  0xd2   : > { %p4541_p4 = pmov %p4539_p1 }
  0xd3   : > { %3602 = vsyncadd (%p4540_p3), [#allocation10], 4294967024 }
  0xd4   : > { %3604 = dma.done.wait (%p4541_p4), [#allocation13], 272   ;;  %p4542_p0 = pmov %p4539_p1 }
  0xd6   : > { %3606 = vsyncadd (%p4542_p0), [#allocation13], 4294967024  ;;  %p4543_p6 = pmov %p4542_p0 }
  0xd7   : > { %p4544_p9 = pmov %p4542_p0 }
  0xd8   : > { %3608 = dma.done.wait (%p4543_p6), [#allocation16], 272  }
  0xd9   : > { %3610 = vsyncadd (%p4544_p9), [#allocation16], 4294967024  ;;  %p4545_p10 = pmov %p4542_p0 }
  0xda   : > { %p4546_p12 = pmov %p4542_p0 }
  0xdb   : > { %3612 = dma.done.wait (%p4545_p10), [#allocation19], 256  }
  0xdc   : > { %3614 = vsyncadd (%p4546_p12), [#allocation19], 4294967040  ;;  %v3651_v0 = vmov 0.0   ;;  %vm3652_vm0 = vmmov 0   ;;  %v3197_v1 = vld [vmem:[#allocation8 + $0x8] sm:$0xff]   ;;  %v3198_v2 = vld [vmem:[#allocation11 + $0x8] sm:$0xff]   ;;  %v1065_v42 = vlaneseq }
  0xdd   : > { %2884 = vmatprep.subr.bf16.mxu0 %v3651_v0  ;;  %2892 = vmatprep.subr.bf16.mxu1 %v3651_v0  ;;  %v3199_v3 = vld [vmem:[#allocation8] sm:$0xff]   ;;  %v3200_v4 = vld [vmem:[#allocation11] sm:$0xff]   ;;  %vm876_vm1 = vcmask 261120   ;;  %v2763_v9 = vld [vmem:[#allocation9] ss:$0 sm:$0xff]  ;;  %vm1070_vm2 = vcmask 64512  }
  0xde   : > { %2888 = vmatprep.mubr.msk.bf16.mxu0 %vm3652_vm0, %v3651_v0  ;;  %2896 = vmatprep.mubr.msk.bf16.mxu1 %vm3652_vm0, %v3651_v0  ;;  %v4059_v5 = vld [vmem:[%s736_s1] sm:$0xff]   ;;  %v4062_v6 = vld [vmem:[%s4020_s24] sm:$0xff]   ;;  %s3653_s18 = smov 120   ;;  %vm1194_vm3 = vcmask 1043456   ;;  %v1066_v43 = vshrl.u32 %v1065_v42, 7  ;;  %v1068_v44 = vand.u32 127, %v1065_v42 }
  0xdf   : > { %2885 = vmatpush3.bf16.msra.mxu0 %v3197_v1  ;;  %2893 = vmatpush3.bf16.msra.mxu1 %v3198_v2  ;;  %v3203_v7 = vld [vmem:[#allocation14 + $0x8] sm:$0xff]   ;;  %v3204_v8 = vld [vmem:[#allocation14] sm:$0xff]   ;;  %v2768_v10 = vld [vmem:[#allocation12] ss:$0 sm:$0xff]  ;;  %s3654_s20 = smov 112   ;;  %s3655_s21 = smov 104  }
  0xe0   : > { %2886 = vmatprep.subr.bf16.mxu0 %v3651_v0  ;;  %2894 = vmatprep.subr.bf16.mxu1 %v3651_v0  ;;  %v2773_v31 = vld [vmem:[#allocation15] ss:$0 sm:$0xff]  ;;  %vm4114_vm4 = vcmp.gt.s32.totalorder %v1068_v44, %v1066_v43  ;;  %s2762_s19 = sshll.u32 %s4016_s23, 4  ;;  %s4549_s25 = sld [smem:[#allocation45_spill]] }
  0xe1   : > { %s4309_s7 = scalar_lea.vmem [#allocation21], %s2762_s19  ;;  %s4550_s29 = sld [smem:[#allocation46_spill]] }
  0xe2   : > { %s4551_s4 = sld [smem:[#allocation47_spill]]  ;;  %s2825_s1 = sshll.u32 %s3794_s0, 8 }
  0xe3   : > { %2887 = vmatpush3.bf16.msra.mxu0 %v3199_v3  ;;  %2895 = vmatpush3.bf16.msra.mxu1 %v3200_v4  ;;  %s4552_s17 = sld [smem:[#allocation49_spill]]  ;;  %s2508_s30 = scalar_lea.sflag [#allocation22], %s4016_s23 }
  0xe4   : > { %2900 = vmatprep.subr.bf16.mxu0 %v3651_v0  ;;  %2908 = vmatprep.subr.bf16.mxu1 %v3651_v0  ;;  %p4553_p5 = scmp.ne.s32.totalorder %s4529_s16, 0  ;;  %s3656_s3 = smov [#allocation21]  }
  0xe6   : > { %2889 = vmatmul.mubr.msk.bf16.vlgmr.msra.gmra.mxu0 %vm876_vm1, %v4059_v5  ;;  %2897 = vmatmul.mubr.msk.bf16.vlgmr.msra.gmra.mxu1 %vm876_vm1, %v4062_v6 }
  0xe7   : > { %2901 = vmatpush3.bf16.msra.mxu0 %v3203_v7  ;;  %2904 = vmatprep.mubr.msk.bf16.mxu0 %vm3652_vm0, %v3651_v0 }
  0xe8   : > { %2902 = vmatprep.subr.bf16.mxu0 %v3651_v0  ;;  %2910 = vmatprep.mubr.msk.bf16.mxu1 %vm3652_vm0, %v3651_v0 }
  0xe9   : > { %s4391_s12 = scalar_lea.hbm %s4552_s17, %s2825_s1 }
  0xeb   : > { %2903 = vmatpush3.bf16.msra.mxu0 %v3204_v8 }
  0xec   : > { %2914 = vmatprep.subr.bf16.mxu0 %v3651_v0 }
  0xee   : > { %2905 = vmatmul.mubr.msk.bf16.vlgmr.msra.gmra.mxu0 %vm876_vm1, %v4062_v6 }
  0xef   : > { %2916 = vmatprep.mubr.msk.bf16.mxu0 %vm3652_vm0, %v3651_v0 }
 0x1a6   : > { %v914_v11 = vpop.f32.mrf.mxu0  ;;  %v988_v12 = vpop.f32.mrf.mxu1 }
 0x1a7   : > { %v915_v13 = vadd.f32 %v2763_v9, %v914_v11  ;;  %v989_v14 = vadd.f32 %v2768_v10, %v988_v12 }
 0x1a8   : > { %v2890_v15 = vpop.f32.mrf.mxu0  ;;  %v2898_v16 = vpop.f32.mrf.mxu1 }
 0x1a9   : > { %v4080_v17 = vpack.c.bf16 %v989_v14, %v989_v14  ;;  %v921_v20 = vmul.f32 0.35355338, %v915_v13 }
 0x1aa   : > { %v917_v18 = vpop.f32.mrf.mxu0  ;;  %v991_v19 = vpop.f32.mrf.mxu1 }
 0x1ab   : > { %v992_v21 = vadd.f32 %v2768_v10, %v991_v19  ;;  %v1075_v23 = vsel %vm1070_vm2, %v4080_v17, 0  ;;  %v918_v25 = vadd.f32 %v2763_v9, %v917_v18  ;;  %v4087_v27 = vpack.c.bf16 %v921_v20, %v921_v20 }
 0x1ac   : > { %v2891_v22 = vpop.f32.mrf.mxu0  ;;  %v2899_v24 = vpop.f32.mrf.mxu1  ;;  %2909 = vmatpush3.bf16.xpose.msra.mxu1 %v1075_v23 }
 0x1ad   : > { %v4084_v26 = vpack.c.bf16 %v992_v21, %v992_v21  ;;  %2920 = vmatprep.subr.bf16.mxu1 %v3651_v0  ;;  %v922_v29 = vmul.f32 0.35355338, %v918_v25 }
 0x1ae   : > { %v1052_v32 = vpop.f32.mrf.mxu0 }
 0x1af   : > { %1344 = vrot.lane.b32.xlu1 %v4084_v26, %s3653_s18  ;;  %v1121_v28 = vsel %vm1070_vm2, %v4084_v26, 0  ;;  %v4098_v30 = vpack.c.bf16 %v922_v29, %v922_v29  ;;  %v1053_v34 = vadd.f32 %v2773_v31, %v1052_v32 }
 0x1b0   : > { %2915 = vmatpush3.bf16.xpose.msra.mxu0 %v1121_v28  ;;  %v2906_v33 = vpop.f32.mrf.mxu0 }
 0x1b1   : > { %2926 = vmatprep.subr.bf16.mxu0 %v3651_v0  ;;  %v4104_v38 = vpack.c.bf16 %v1053_v34, %v1053_v34 }
 0x1b2   : > { %v1055_v35 = vpop.f32.mrf.mxu0 }
 0x1b3   : > { %2911 = vmatmul.mubr.msk.bf16.vlgmr.msra.gmra.mxu1 %vm1070_vm2, %v4087_v27  ;;  %v1056_v36 = vadd.f32 %v2773_v31, %v1055_v35  ;;  %v1196_v40 = vsel %vm1194_vm3, %v4104_v38, 0 }
 0x1b4   : > { %2922 = vmatprep.mubr.msk.bf16.mxu1 %vm3652_vm0, %v3651_v0  ;;  %v2907_v37 = vpop.f32.mrf.mxu0  ;;  %2921 = vmatpush3.bf16.msra.mxu1 %v1196_v40 }
 0x1b5   : > { %v4106_v39 = vpack.c.bf16 %v1056_v36, %v1056_v36  ;;  %2932 = vmatprep.subr.bf16.mxu1 %v3651_v0 }
 0x1b7   : > { %2917 = vmatmul.mubr.msk.bf16.vlgmr.msra.gmra.mxu0 %vm1070_vm2, %v4098_v30  ;;  %v1242_v41 = vsel %vm1194_vm3, %v4106_v39, 0 }
 0x1b8   : > { %2928 = vmatprep.mubr.msk.bf16.mxu0 %vm3652_vm0, %v3651_v0  ;;  %2927 = vmatpush3.bf16.msra.mxu0 %v1242_v41 }
 0x1b9   : > { %2938 = vmatprep.subr.bf16.mxu0 %v3651_v0 }
 0x221   : > { %v1345_v7 = vpop.permute.xlu1 %1344 }
 0x222   : > { %v1350_v19 = vsel %vm1070_vm2, %v1345_v7, 0 }
 0x273   : > { %v1111_v46 = vpop.f32.mrf.mxu1 }
 0x274   : > { %v1165_v47 = vsel %vm4114_vm4, -1e+30, %v1111_v46 }
 0x275   : > { %v2912_v48 = vpop.f32.mrf.mxu1  ;;  %v1167_v49 = vsel %vm1070_vm2, %v1165_v47, -inf }
 0x276   : > { %1168 = vmax.xlane.f32.xlu0 %v1167_v49 }
 0x277   : > { %v1114_v50 = vpop.f32.mrf.mxu1  ;;  %v1157_v51 = vpop.f32.mrf.mxu0 }
 0x278   : > { %v1166_v52 = vsel %vm4114_vm4, -1e+30, %v1157_v51 }
 0x279   : > { %v2913_v53 = vpop.f32.mrf.mxu1  ;;  %v2918_v54 = vpop.f32.mrf.mxu0  ;;  %v1170_v55 = vsel %vm1070_vm2, %v1166_v52, -inf }
 0x27a   : > { %1171 = vmax.xlane.f32.xlu0 %v1170_v55 }
 0x27b   : > { %v1160_v56 = vpop.f32.mrf.mxu0 }
 0x27d   : > { %v2919_v57 = vpop.f32.mrf.mxu0 }
 0x290   : > { %1292 = vrot.lane.b32.xlu0 %v4080_v17, %s3653_s18 }
 0x2ff   : > { %v1169_v58 = vpop.xlane.xlu0 %1168 }
 0x300   : > { %v1173_v59 = vsub.f32 %v1165_v47, %v1169_v58 }
 0x302   : > { %v1175_v60 = vmul.f32 1.442695, %v1173_v59 }
 0x303   : > { %v1172_v61 = vpop.xlane.xlu0 %1171 }
 0x304   : > { %3211 = vpow2.f32 %v1175_v60  ;;  %v1174_v62 = vsub.f32 %v1166_v52, %v1172_v61 }
 0x306   : > { %v1177_v63 = vmul.f32 1.442695, %v1174_v62 }
 0x307   : > { %v1293_v12 = vpop.permute.xlu0 %1292 }
 0x308   : > { %3213 = vpow2.f32 %v1177_v63  ;;  %v1298_v15 = vsel %vm1070_vm2, %v1293_v12, 0 }
 0x311   : > { %v3212_v1 = vpop.eup %3211 }
 0x312   : > { %v1179_v2 = vsel %vm1070_vm2, %v3212_v1, 0.0 }
 0x313   : > { %1180 = vadd.xlane.f32.xlu1 %v1179_v2 }
 0x315   : > { %v3214_v3 = vpop.eup %3213 }
 0x316   : > { %v1182_v4 = vsel %vm1070_vm2, %v3214_v3, 0.0 }
 0x317   : > { %1183 = vadd.xlane.f32.xlu1 %v1182_v4 }
 0x328   : > { %1289 = vrot.lane.b32.xlu1 %v4087_v27, %s3653_s18 }
 0x32c   : > { %1341 = vrot.lane.b32.xlu1 %v4098_v30, %s3653_s18 }
 0x39c   : > { %v1181_v8 = vpop.xlane.xlu1 %1180 }
 0x39d   : > { %3215 = vrcp.f32 %v1181_v8  ;;  %v1285_v8 = vld [vmem:[%s4468_s8] sm:$0xf] }
 0x39e   : > { %v1570_v12 = vsel %vm1194_vm3, %v1285_v8, 0 }
 0x3a0   : > { %v1184_v9 = vpop.xlane.xlu1 %1183 }
 0x3a1   : > { %3217 = vrcp.f32 %v1184_v9 }
 0x3a4   : > { %v1290_v20 = vpop.permute.xlu1 %1289 }
 0x3a8   : > { %v1342_v21 = vpop.permute.xlu1 %1341 }
 0x3aa   : > { %v3216_v10 = vpop.eup %3215 }
 0x3ab   : > { %v4132_v11 = vmul.f32 %v3216_v10, %v3212_v1 }
 0x3ad   : > { %v1189_v13 = vpack.c.bf16 %v4132_v11, %v4132_v11 }
 0x3ae   : > { %v3218_v14 = vpop.eup %3217 }
 0x3af   : > { %2923 = vmatmul.mubr.msk.bf16.vlgmr.msra.gmra.mxu1 %vm1070_vm2, %v1189_v13  ;;  %v4138_v16 = vmul.f32 %v3218_v14, %v3214_v3 }
 0x3b0   : > { %2933 = vmatpush3.bf16.xpose.msra.mxu1 %v1298_v15  ;;  %2934 = vmatprep.mubr.msk.bf16.mxu1 %vm3652_vm0, %v3651_v0 }
 0x3b1   : > { %v1190_v18 = vpack.c.bf16 %v4138_v16, %v4138_v16  ;;  %2944 = vmatprep.subr.bf16.mxu1 %v3651_v0 }
 0x3b3   : > { %2929 = vmatmul.mubr.msk.bf16.vlgmr.msra.gmra.mxu0 %vm1070_vm2, %v1190_v18 }
 0x3b4   : > { %2939 = vmatpush3.bf16.xpose.msra.mxu0 %v1350_v19  ;;  %2940 = vmatprep.mubr.msk.bf16.mxu0 %vm3652_vm0, %v3651_v0  ;;  %v2785_v19 = vld [vmem:[%s4468_s8 + $0x4] sm:$0xf] }
 0x3b5   : > { %2950 = vmatprep.subr.bf16.mxu0 %v3651_v0 }
 0x3b7   : > { %2935 = vmatmul.mubr.msk.bf16.vlgmr.msra.gmra.mxu1 %vm1070_vm2, %v1290_v20  ;;  %v1523_v20 = vsel %vm1194_vm3, %v2785_v19, 0 }
 0x3b8   : > { %2946 = vmatprep.mubr.msk.bf16.mxu1 %vm3652_vm0, %v3651_v0 }
 0x3bb   : > { %2941 = vmatmul.mubr.msk.bf16.vlgmr.msra.gmra.mxu0 %vm1070_vm2, %v1342_v21 }
 0x3bc   : > { %2952 = vmatprep.mubr.msk.bf16.mxu0 %vm3652_vm0, %v3651_v0 }
 0x46f   : > { %v4156_v22 = vpop.f32.mrf.mxu1 }
 0x471   : > { %v2924_v23 = vpop.f32.mrf.mxu1 }
 0x473   : > { %v1235_v24 = vpop.f32.mrf.mxu1  ;;  %v4158_v25 = vpop.f32.mrf.mxu0 }
 0x474   : > { %v1284_v28 = vpack.c.bf16 %v4158_v25, %v4156_v22 }
 0x475   : > { %v2925_v29 = vpop.f32.mrf.mxu1  ;;  %v2930_v31 = vpop.f32.mrf.mxu0 }
 0x477   : > { %v1281_v32 = vpop.f32.mrf.mxu0  ;;  %v1334_v33 = vpop.f32.mrf.mxu1 }
 0x478   : > { %v1392_v34 = vsel %vm4114_vm4, -1e+30, %v1334_v33 }
 0x479   : > { %v2931_v35 = vpop.f32.mrf.mxu0  ;;  %v2936_v36 = vpop.f32.mrf.mxu1  ;;  %v1394_v37 = vsel %vm1070_vm2, %v1392_v34, -inf }
 0x47a   : > { %1395 = vmax.xlane.f32.xlu0 %v1394_v37 }
 0x47b   : > { %v1337_v40 = vpop.f32.mrf.mxu1  ;;  %v1386_v41 = vpop.f32.mrf.mxu0 }
 0x47c   : > { %v1393_v42 = vsel %vm4114_vm4, -1e+30, %v1386_v41 }
 0x47d   : > { %v2937_v43 = vpop.f32.mrf.mxu1  ;;  %v2942_v44 = vpop.f32.mrf.mxu0  ;;  %v1397_v46 = vsel %vm1070_vm2, %v1393_v42, -inf }
 0x47e   : > { %1398 = vmax.xlane.f32.xlu1 %v1397_v46 }
 0x47f   : > { %v1389_v47 = vpop.f32.mrf.mxu0 }
 0x481   : > { %v2943_v48 = vpop.f32.mrf.mxu0 }
 0x48f   : > { %1468 = vrot.lane.b32.xlu1 %v4106_v39, %s3653_s18 }
 0x493   : > { %1617 = vrot.lane.b32.xlu1 %v4080_v17, %s3654_s20 }
 0x497   : > { %1667 = vrot.lane.b32.xlu1 %v4084_v26, %s3654_s20 }
 0x49b   : > { %1665 = vrot.lane.b32.xlu1 %v4098_v30, %s3654_s20 }
 0x503   : > { %v1396_v49 = vpop.xlane.xlu0 %1395 }
 0x504   : > { %v1400_v50 = vsub.f32 %v1392_v34, %v1396_v49 }
 0x506   : > { %v1402_v51 = vmul.f32 1.442695, %v1400_v50 }
 0x507   : > { %v1399_v52 = vpop.xlane.xlu1 %1398 }
 0x508   : > { %3219 = vpow2.f32 %v1402_v51  ;;  %v1401_v53 = vsub.f32 %v1393_v42, %v1399_v52 }
 0x50a   : > { %v1404_v54 = vmul.f32 1.442695, %v1401_v53 }
 0x50b   : > { %v1469_v55 = vpop.permute.xlu1 %1468 }
 0x50c   : > { %3221 = vpow2.f32 %v1404_v54  ;;  %v1474_v56 = vsel %vm1194_vm3, %v1469_v55, 0 }
 0x50d   : > { %2951 = vmatpush3.bf16.msra.mxu0 %v1474_v56 }
 0x50e   : > { %2962 = vmatprep.subr.bf16.mxu0 %v3651_v0 }
 0x50f   : > { %v1618_v13 = vpop.permute.xlu1 %1617 }
 0x510   : > { %v1623_v31 = vsel %vm1070_vm2, %v1618_v13, 0 }
 0x513   : > { %v1668_v14 = vpop.permute.xlu1 %1667 }
 0x514   : > { %v1673_v15 = vsel %vm1070_vm2, %v1668_v14, 0 }
 0x515   : > { %v3220_v57 = vpop.eup %3219 }
 0x516   : > { %v1406_v58 = vsel %vm1070_vm2, %v3220_v57, 0.0 }
 0x517   : > { %1407 = vadd.xlane.f32.xlu0 %v1406_v58  ;;  %v1666_v18 = vpop.permute.xlu1 %1665 }
 0x519   : > { %v3222_v59 = vpop.eup %3221 }
 0x51a   : > { %v1409_v60 = vsel %vm1070_vm2, %v3222_v59, 0.0 }
 0x51b   : > { %1410 = vadd.xlane.f32.xlu0 %v1409_v60 }
 0x531   : > { %1419 = vrot.lane.b32.xlu0 %v4104_v38, %s3653_s18  ;;  %s2534_s18 = sshll.u32 %s4309_s7, 4  ;;  %s4393_s18 = int_to_ptr.vmem [resolvable:$true] %s2534_s18 }
 0x535   : > { %1615 = vrot.lane.b32.xlu0 %v4087_v27, %s3654_s20 }
 0x5a0   : > { %v1408_v61 = vpop.xlane.xlu0 %1407 }
 0x5a1   : > { %3223 = vrcp.f32 %v1408_v61 }
 0x5a4   : > { %v1411_v62 = vpop.xlane.xlu0 %1410 }
 0x5a5   : > { %3225 = vrcp.f32 %v1411_v62 }
 0x5a8   : > { %v1420_v63 = vpop.permute.xlu0 %1419 }
 0x5a9   : > { %v1425_v1 = vsel %vm1194_vm3, %v1420_v63, 0 }
 0x5aa   : > { %2945 = vmatpush3.bf16.msra.mxu1 %v1425_v1 }
 0x5ab   : > { %2956 = vmatprep.subr.bf16.mxu1 %v3651_v0 }
 0x5ac   : > { %v1616_v35 = vpop.permute.xlu0 %1615 }
 0x5ae   : > { %v3224_v2 = vpop.eup %3223 }
 0x5af   : > { %v4186_v3 = vmul.f32 %v3224_v2, %v3220_v57 }
 0x5b1   : > { %v1416_v4 = vpack.c.bf16 %v4186_v3, %v4186_v3 }
 0x5b2   : > { %v3226_v7 = vpop.eup %3225 }
 0x5b3   : > { %2947 = vmatmul.mubr.msk.bf16.vlgmr.msra.gmra.mxu1 %vm1070_vm2, %v1416_v4  ;;  %v4194_v9 = vmul.f32 %v3226_v7, %v3222_v59 }
 0x5b4   : > { %2958 = vmatprep.mubr.msk.bf16.mxu1 %vm3652_vm0, %v3651_v0  ;;  %2957 = vmatpush3.bf16.msra.mxu1 %v1523_v20 }
 0x5b5   : > { %v1417_v10 = vpack.c.bf16 %v4194_v9, %v4194_v9  ;;  %2968 = vmatprep.subr.bf16.mxu1 %v3651_v0 }
 0x5b7   : > { %2953 = vmatmul.mubr.msk.bf16.vlgmr.msra.gmra.mxu0 %vm1070_vm2, %v1417_v10  ;;  %v1614_v10 = vadd.f32 %v4194_v9, %v4138_v16 }
 0x5b8   : > { %2963 = vmatpush3.bf16.msra.mxu0 %v1570_v12  ;;  %2964 = vmatprep.mubr.msk.bf16.mxu0 %vm3652_vm0, %v3651_v0 }
 0x5b9   : > { %2974 = vmatprep.subr.bf16.mxu0 %v3651_v0 }
 0x5bf   : > { %2965 = vmatmul.mubr.msk.bf16.vlgmr.msra.gmra.mxu0 %vm1070_vm2, %v1284_v28 }
 0x5c0   : > { %2975 = vmatpush3.bf16.xpose.msra.mxu0 %v1673_v15  ;;  %2976 = vmatprep.mubr.msk.bf16.mxu0 %vm3652_vm0, %v3651_v0 }
 0x5c1   : > { %2986 = vmatprep.subr.bf16.mxu0 %v3651_v0 }
 0x5c7   : > { %2977 = vmatmul.mubr.msk.bf16.vlgmr.msra.gmra.mxu0 %vm1070_vm2, %v1666_v18 }
 0x5c8   : > { %2988 = vmatprep.mubr.msk.bf16.mxu0 %vm3652_vm0, %v3651_v0 }
 0x673   : > { %v1461_v21 = vpop.f32.mrf.mxu1 }
 0x675   : > { %v2948_v22 = vpop.f32.mrf.mxu1 }
 0x676   : > { %v1613_v22 = vadd.f32 %v4186_v3, %v4132_v11 }
 0x677   : > { %v1464_v23 = vpop.f32.mrf.mxu1  ;;  %v1510_v24 = vpop.f32.mrf.mxu0 }
 0x678   : > { %v1516_v25 = vpack.c.bf16 %v1510_v24, %v1461_v21 }
 0x679   : > { %v2949_v28 = vpop.f32.mrf.mxu1  ;;  %v2954_v29 = vpop.f32.mrf.mxu0 }
 0x67a   : > { %2959 = vmatmul.mubr.msk.bf16.vlgmr.msra.gmra.mxu1 %vm1070_vm2, %v1516_v25 }
 0x67b   : > { %2969 = vmatpush3.bf16.xpose.msra.mxu1 %v1623_v31  ;;  %v1513_v32 = vpop.f32.mrf.mxu0  ;;  %2970 = vmatprep.mubr.msk.bf16.mxu1 %vm3652_vm0, %v3651_v0 }
 0x67c   : > { %2980 = vmatprep.subr.bf16.mxu1 %v3651_v0  ;;  %v2792_v32 = vld [vmem:[%s4468_s8 + $0x8] sm:$0xf] }
 0x67d   : > { %v2955_v33 = vpop.f32.mrf.mxu0 }
 0x67e   : > { %v1844_v33 = vsel %vm1194_vm3, %v2792_v32, 0 }
 0x67f   : > { %v4226_v34 = vpop.f32.mrf.mxu0 }
 0x681   : > { %v2966_v36 = vpop.f32.mrf.mxu0 }
 0x682   : > { %2971 = vmatmul.mubr.msk.bf16.vlgmr.msra.gmra.mxu1 %vm1070_vm2, %v1616_v35 }
 0x683   : > { %v4229_v37 = vpop.f32.mrf.mxu0  ;;  %2982 = vmatprep.mubr.msk.bf16.mxu1 %vm3652_vm0, %v3651_v0 }
 0x685   : > { %v2967_v40 = vpop.f32.mrf.mxu0 }
 0x687   : > { %v1709_v41 = vpop.f32.mrf.mxu0 }
 0x688   : > { %v1716_v42 = vsel %vm4114_vm4, -1e+30, %v1709_v41 }
 0x689   : > { %v2978_v43 = vpop.f32.mrf.mxu0  ;;  %v1720_v44 = vsel %vm1070_vm2, %v1716_v42, -inf }
 0x68a   : > { %1721 = vmax.xlane.f32.xlu1 %v1720_v44 }
 0x68b   : > { %v1712_v46 = vpop.f32.mrf.mxu0 }
 0x68d   : > { %v2979_v47 = vpop.f32.mrf.mxu0 }
 0x69b   : > { %1789 = vrot.lane.b32.xlu1 %v4106_v39, %s3654_s20 }
 0x69f   : > { %1893 = vrot.lane.b32.xlu1 %v4080_v17, %s3655_s21 }
 0x6a3   : > { %1943 = vrot.lane.b32.xlu1 %v4084_v26, %s3655_s21 }
 0x6a7   : > { %1941 = vrot.lane.b32.xlu1 %v4098_v30, %s3655_s21 }
 0x713   : > { %v1722_v48 = vpop.xlane.xlu1 %1721 }
 0x714   : > { %v1724_v51 = vsub.f32 %v1716_v42, %v1722_v48 }
 0x716   : > { %v1727_v52 = vmul.f32 1.442695, %v1724_v51 }
 0x717   : > { %v1790_v49 = vpop.permute.xlu1 %1789 }
 0x718   : > { %v1795_v50 = vsel %vm1194_vm3, %v1790_v49, 0  ;;  %3227 = vpow2.f32 %v1727_v52 }
 0x719   : > { %2987 = vmatpush3.bf16.msra.mxu0 %v1795_v50 }
 0x71a   : > { %2998 = vmatprep.subr.bf16.mxu0 %v3651_v0 }
 0x71b   : > { %v1894_v13 = vpop.permute.xlu1 %1893 }
 0x71c   : > { %v1899_v18 = vsel %vm1070_vm2, %v1894_v13, 0 }
 0x71f   : > { %v1944_v42 = vpop.permute.xlu1 %1943 }
 0x720   : > { %v1949_v47 = vsel %vm1070_vm2, %v1944_v42, 0 }
 0x723   : > { %v1942_v50 = vpop.permute.xlu1 %1941 }
 0x725   : > { %v3228_v58 = vpop.eup %3227 }
 0x726   : > { %v1732_v61 = vsel %vm1070_vm2, %v3228_v58, 0.0 }
 0x73a   : > { %v4246_v53 = vpop.f32.mrf.mxu1 }
 0x73c   : > { %v2960_v54 = vpop.f32.mrf.mxu1 }
 0x73e   : > { %v4248_v17 = vpop.f32.mrf.mxu1 }
 0x740   : > { %v2961_v55 = vpop.f32.mrf.mxu1 }
 0x742   : > { %v1659_v26 = vpop.f32.mrf.mxu1 }
 0x743   : > { %v1715_v30 = vsel %vm4114_vm4, -1e+30, %v1659_v26 }
 0x744   : > { %v2972_v56 = vpop.f32.mrf.mxu1  ;;  %v1717_v57 = vsel %vm1070_vm2, %v1715_v30, -inf }
 0x745   : > { %1718 = vmax.xlane.f32.xlu0 %v1717_v57 }
 0x746   : > { %v1662_v59 = vpop.f32.mrf.mxu1 }
 0x747   : > { %v1610_v59 = vadd.f32 %v4229_v37, %v4248_v17 }
 0x748   : > { %v2973_v60 = vpop.f32.mrf.mxu1 }
 0x749   : > { %1733 = vadd.xlane.f32.xlu0 %v1732_v61 }
 0x7ce   : > { %v1719_v62 = vpop.xlane.xlu0 %1718 }
 0x7cf   : > { %v1723_v63 = vsub.f32 %v1715_v30, %v1719_v62  ;;  %v1607_v30 = vadd.f32 %v4226_v34, %v4246_v53 }
 0x7d1   : > { %v1725_v1 = vmul.f32 1.442695, %v1723_v63 }
 0x7d2   : > { %v1734_v2 = vpop.xlane.xlu0 %1733 }
 0x7d3   : > { %3229 = vpow2.f32 %v1725_v1 }
 0x7d4   : > { %3231 = vrcp.f32 %v1734_v2 }
 0x7e0   : > { %v3230_v4 = vpop.eup %3229 }
 0x7e1   : > { %v3232_v7 = vpop.eup %3231  ;;  %v1729_v8 = vsel %vm1070_vm2, %v3230_v4, 0.0 }
 0x7e2   : > { %1730 = vadd.xlane.f32.xlu0 %v1729_v8  ;;  %v1738_v12 = vmul.f32 %v3232_v7, %v3228_v58 }
 0x7e4   : > { %v1740_v14 = vpack.c.bf16 %v1738_v12, %v1738_v12  ;;  %v4257_v15 = vadd.f32 %v1738_v12, %v1614_v10 }
 0x7e6   : > { %2989 = vmatmul.mubr.msk.bf16.vlgmr.msra.gmra.mxu0 %vm1070_vm2, %v1740_v14 }
 0x7e7   : > { %2999 = vmatpush3.bf16.xpose.msra.mxu0 %v1899_v18  ;;  %3000 = vmatprep.mubr.msk.bf16.mxu0 %vm3652_vm0, %v3651_v0 }
 0x7e8   : > { %3010 = vmatprep.subr.bf16.mxu0 %v3651_v0 }
 0x7f8   : > { %1741 = vrot.lane.b32.xlu0 %v4104_v38, %s3654_s20 }
 0x7fc   : > { %1891 = vrot.lane.b32.xlu0 %v4087_v27, %s3655_s21 }
 0x86b   : > { %v1731_v16 = vpop.xlane.xlu0 %1730 }
 0x86c   : > { %3233 = vrcp.f32 %v1731_v16 }
 0x86f   : > { %v1742_v9 = vpop.permute.xlu0 %1741 }
 0x870   : > { %v1747_v19 = vsel %vm1194_vm3, %v1742_v9, 0 }
 0x871   : > { %2981 = vmatpush3.bf16.msra.mxu1 %v1747_v19 }
 0x872   : > { %2992 = vmatprep.subr.bf16.mxu1 %v3651_v0 }
 0x873   : > { %v1892_v20 = vpop.permute.xlu0 %1891 }
 0x874   : > { %3001 = vmatmul.mubr.msk.bf16.vlgmr.msra.gmra.mxu0 %vm1070_vm2, %v1892_v20 }
 0x875   : > { %3012 = vmatprep.mubr.msk.bf16.mxu0 %vm3652_vm0, %v3651_v0 }
 0x879   : > { %v3234_v21 = vpop.eup %3233 }
 0x87a   : > { %v1737_v23 = vmul.f32 %v3234_v21, %v3230_v4 }
 0x87c   : > { %v1739_v27 = vpack.c.bf16 %v1737_v23, %v1737_v23  ;;  %v1889_v24 = vadd.f32 %v1737_v23, %v1613_v22 }
 0x87e   : > { %2983 = vmatmul.mubr.msk.bf16.vlgmr.msra.gmra.mxu1 %vm1070_vm2, %v1739_v27 }
 0x87f   : > { %2994 = vmatprep.mubr.msk.bf16.mxu1 %vm3652_vm0, %v3651_v0  ;;  %2993 = vmatpush3.bf16.msra.mxu1 %v1844_v33 }
 0x880   : > { %3004 = vmatprep.subr.bf16.mxu1 %v3651_v0 }
 0x8a6   : > { %v1831_v25 = vpop.f32.mrf.mxu0 }
 0x8a8   : > { %v2990_v28 = vpop.f32.mrf.mxu0 }
 0x8aa   : > { %v1834_v29 = vpop.f32.mrf.mxu0 }
 0x8ac   : > { %v2991_v31 = vpop.f32.mrf.mxu0 }
 0x934   : > { %v1935_v11 = vpop.f32.mrf.mxu0 }
 0x935   : > { %v1991_v3 = vsel %vm4114_vm4, -1e+30, %v1935_v11 }
 0x936   : > { %v3002_v35 = vpop.f32.mrf.mxu0  ;;  %v1993_v36 = vsel %vm1070_vm2, %v1991_v3, -inf }
 0x937   : > { %1994 = vmax.xlane.f32.xlu0 %v1993_v36 }
 0x938   : > { %v1938_v40 = vpop.f32.mrf.mxu0 }
 0x93a   : > { %v3003_v41 = vpop.f32.mrf.mxu0 }
 0x93b   : > { %v2800_v41 = vld [vmem:[%s4469_s9] ss:$0 sm:$0xff] }
 0x93e   : > { %v1783_v43 = vpop.f32.mrf.mxu1 }
 0x93f   : > { %v1837_v44 = vpack.c.bf16 %v1831_v25, %v1783_v43  ;;  %v2798_v25 = vld [vmem:[%s4468_s8 + $0xc] sm:$0xf]  ;;  %v844_v43 = vunpack.c.l.bf16 %v4062_v6 }
 0x940   : > { %v2984_v46 = vpop.f32.mrf.mxu1  ;;  %v2120_v28 = vsel %vm1194_vm3, %v2798_v25, 0 }
 0x941   : > { %2995 = vmatmul.mubr.msk.bf16.vlgmr.msra.gmra.mxu1 %vm1070_vm2, %v1837_v44 }
 0x942   : > { %3005 = vmatpush3.bf16.xpose.msra.mxu1 %v1949_v47  ;;  %v1786_v48 = vpop.f32.mrf.mxu1  ;;  %3006 = vmatprep.mubr.msk.bf16.mxu1 %vm3652_vm0, %v3651_v0  ;;  %v846_v47 = vunpack.c.l.bf16 %v4059_v5 }
 0x943   : > { %3016 = vmatprep.subr.bf16.mxu1 %v3651_v0 }
 0x944   : > { %v2985_v49 = vpop.f32.mrf.mxu1 }
 0x949   : > { %3007 = vmatmul.mubr.msk.bf16.vlgmr.msra.gmra.mxu1 %vm1070_vm2, %v1942_v50 }
 0x94a   : > { %3018 = vmatprep.mubr.msk.bf16.mxu1 %vm3652_vm0, %v3651_v0 }
 0x9c0   : > { %v1995_v51 = vpop.xlane.xlu0 %1994 }
 0x9c1   : > { %v1999_v52 = vsub.f32 %v1991_v3, %v1995_v51  ;;  %v845_v51 = vunpack.c.h.bf16 %v4062_v6 }
 0x9c3   : > { %v2001_v54 = vmul.f32 1.442695, %v1999_v52 }
 0x9c5   : > { %3235 = vpow2.f32 %v2001_v54 }
 0x9d2   : > { %v3236_v55 = vpop.eup %3235 }
 0x9d3   : > { %v2005_v26 = vsel %vm1070_vm2, %v3236_v55, 0.0 }
 0x9d4   : > { %2006 = vadd.xlane.f32.xlu0 %v2005_v26  ;;  %v847_v26 = vunpack.c.h.bf16 %v4059_v5 }
 0xa01   : > { %v1880_v56 = vpop.f32.mrf.mxu1 }
 0xa02   : > { %v4297_v57 = vadd.f32 %v1880_v56, %v1607_v30 }
 0xa03   : > { %v2996_v58 = vpop.f32.mrf.mxu1 }
 0xa05   : > { %v1883_v60 = vpop.f32.mrf.mxu1 }
 0xa06   : > { %v4301_v61 = vadd.f32 %v1883_v60, %v1610_v59 }
 0xa07   : > { %v2997_v62 = vpop.f32.mrf.mxu1 }
 0xa09   : > { %v1985_v63 = vpop.f32.mrf.mxu1 }
 0xa0a   : > { %v1992_v1 = vsel %vm4114_vm4, -1e+30, %v1985_v63 }
 0xa0b   : > { %v3008_v2 = vpop.f32.mrf.mxu1  ;;  %v1996_v4 = vsel %vm1070_vm2, %v1992_v1, -inf }
 0xa0c   : > { %1997 = vmax.xlane.f32.xlu1 %v1996_v4 }
 0xa0d   : > { %v1988_v34 = vpop.f32.mrf.mxu1 }
 0xa0e   : > { %v3205_v34 = vld [vmem:[#allocation17 + $0x8] sm:$0xff]  }
 0xa0f   : > { %v3009_v53 = vpop.f32.mrf.mxu1 }
 0xa10   : > { %v3206_v53 = vld [vmem:[#allocation17] sm:$0xff]  }
 0xa1d   : > { %2065 = vrot.lane.b32.xlu1 %v4106_v39, %s3655_s21 }
 0xa5d   : > { %v2007_v7 = vpop.xlane.xlu0 %2006 }
 0xa5e   : > { %3237 = vrcp.f32 %v2007_v7 }
 0xa6b   : > { %v3238_v37 = vpop.eup %3237 }
 0xa6c   : > { %v2013_v17 = vmul.f32 %v3238_v37, %v3236_v55 }
 0xa6e   : > { %v2165_v8 = vadd.f32 %v2013_v17, %v1889_v24  ;;  %v2015_v21 = vpack.c.bf16 %v2013_v17, %v2013_v17 }
 0xa70   : > { %v2499_v10 = vmul.f32 0.25, %v2165_v8 }
 0xa72   : > { %2501 = vst.msk [vmem:[%s4309_s7] sm:$0xff] %vm1070_vm2, %v2499_v10 }
 0xa95   : > { %v1998_v45 = vpop.xlane.xlu1 %1997 }
 0xa96   : > { %v2000_v12 = vsub.f32 %v1992_v1, %v1998_v45 }
 0xa98   : > { %v2003_v13 = vmul.f32 1.442695, %v2000_v12 }
 0xa99   : > { %v2066_v14 = vpop.permute.xlu1 %2065 }
 0xa9a   : > { %3239 = vpow2.f32 %v2003_v13  ;;  %v2071_v18 = vsel %vm1194_vm3, %v2066_v14, 0  ;;  %v2801_v14 = vld [vmem:[%s4470_s10] ss:$0 sm:$0xff] }
 0xa9b   : > { %3017 = vmatpush3.bf16.msra.mxu1 %v2071_v18 }
 0xa9c   : > { %3028 = vmatprep.subr.bf16.mxu1 %v3651_v0 }
 0xaa7   : > { %v3240_v39 = vpop.eup %3239 }
 0xaa8   : > { %v2008_v16 = vsel %vm1070_vm2, %v3240_v39, 0.0 }
 0xaa9   : > { %2009 = vadd.xlane.f32.xlu0 %v2008_v16 }
 0xabf   : > { %2017 = vrot.lane.b32.xlu0 %v4104_v38, %s3655_s21  ;;  %s3519_s21 = scalar_lea.vmem %s4393_s18, 256 }
 0xac0   : > { %p3520_p2 = scmp.ne.s32.totalorder %s4393_s18, %s3519_s21 }
 0xac2   : > { %p3521_p13 = pnand %p3520_p2, %p4553_p5 }
 0xac4   : > { %p3522_p7 = pneg %p3521_p13 }
 0xb32   : > { %v2010_v9 = vpop.xlane.xlu0 %2009 }
 0xb33   : > { %3241 = vrcp.f32 %v2010_v9  ;;  %v2802_v9 = vld [vmem:[%s4471_s11] ss:$0 sm:$0xff] }
 0xb36   : > { %v2018_v19 = vpop.permute.xlu0 %2017 }
 0xb37   : > { %v2023_v20 = vsel %vm1194_vm3, %v2018_v19, 0 }
 0xb38   : > { %3011 = vmatpush3.bf16.msra.mxu0 %v2023_v20 }
 0xb39   : > { %3022 = vmatprep.subr.bf16.mxu0 %v3651_v0 }
 0xb3b   : > { %3013 = vmatmul.mubr.msk.bf16.vlgmr.msra.gmra.mxu0 %vm1070_vm2, %v2015_v21 }
 0xb3c   : > { %3024 = vmatprep.mubr.msk.bf16.mxu0 %vm3652_vm0, %v3651_v0  ;;  %3023 = vmatpush3.bf16.msra.mxu0 %v2120_v28 }
 0xb3d   : > { %3036 = vmatprep.subr.bf16.mxu0 %v3651_v0 }
 0xb40   : > { %v3242_v22 = vpop.eup %3241 }
 0xb41   : > { %v2014_v23 = vmul.f32 %v3242_v22, %v3240_v39 }
 0xb43   : > { %v2016_v27 = vpack.c.bf16 %v2014_v23, %v2014_v23  ;;  %v2166_v38 = vadd.f32 %v2014_v23, %v4257_v15  ;;  %v3207_v23 = vld [vmem:[#allocation18 + $0x8] sm:$0xff]  }
 0xb45   : > { %3019 = vmatmul.mubr.msk.bf16.vlgmr.msra.gmra.mxu1 %vm1070_vm2, %v2016_v27  ;;  %v2500_v24 = vmul.f32 0.25, %v2166_v38  ;;  %v3208_v27 = vld [vmem:[#allocation18] sm:$0xff]   ;;  %v2803_v38 = vld [vmem:[%s4473_s13] ss:$0 sm:$0xff] }
 0xb46   : > { %3032 = vmatprep.mubr.msk.bf16.mxu1 %vm3652_vm0, %v3651_v0  ;;  %3029 = vmatpush3.bf16.msra.mxu1 %v3205_v34 }
 0xb47   : > { %2502 = vst.msk [vmem:[%s4309_s7 + $0x8] sm:$0xff] %vm1070_vm2, %v2500_v24  ;;  %3030 = vmatprep.subr.bf16.mxu1 %v3651_v0 }
 0xb4a   : > { %3031 = vmatpush3.bf16.msra.mxu1 %v3206_v53  ;;  %v2812_v53 = vld [vmem:[%s4550_s29] ss:$0 sm:$0xff] }
 0xb4b   : > { %3044 = vmatprep.subr.mxu1 %v3651_v0 }
 0xbfb   : > { %v2059_v29 = vpop.f32.mrf.mxu0 }
 0xbfd   : > { %v3014_v31 = vpop.f32.mrf.mxu0 }
 0xbff   : > { %v2062_v15 = vpop.f32.mrf.mxu0 }
 0xc01   : > { %v3015_v32 = vpop.f32.mrf.mxu0 }
 0xc05   : > { %v2107_v33 = vpop.f32.mrf.mxu1 }
 0xc06   : > { %v2113_v11 = vpack.c.bf16 %v2107_v33, %v2059_v29 }
 0xc07   : > { %v3020_v3 = vpop.f32.mrf.mxu1 }
 0xc08   : > { %3025 = vmatmul.mubr.msk.bf16.vlgmr.msra.gmra.mxu0 %vm1070_vm2, %v2113_v11  ;;  %v2807_v3 = vld [vmem:[%s4475_s15] ss:$0 sm:$0xff] }
 0xc09   : > { %v2110_v35 = vpop.f32.mrf.mxu1  ;;  %3040 = vmatprep.mubr.msk.bf16.mxu0 %vm3652_vm0, %v3651_v0  ;;  %3037 = vmatpush3.bf16.msra.mxu0 %v3207_v23 }
 0xc0a   : > { %3038 = vmatprep.subr.bf16.mxu0 %v3651_v0 }
 0xc0b   : > { %v3021_v36 = vpop.f32.mrf.mxu1 }
 0xc0d   : > { %3039 = vmatpush3.bf16.msra.mxu0 %v3208_v27 }
 0xcc8   : > { %v2156_v40 = vpop.f32.mrf.mxu0 }
 0xcc9   : > { %v2163_v42 = vadd.f32 %v2156_v40, %v4297_v57 }
 0xcca   : > { %v3026_v44 = vpop.f32.mrf.mxu0 }
 0xccb   : > { %v2174_v46 = vadd.f32 %v2800_v41, %v2163_v42 }
 0xccc   : > { %v2159_v48 = vpop.f32.mrf.mxu0 }
 0xccd   : > { %v2164_v49 = vadd.f32 %v2159_v48, %v4301_v61  ;;  %v2176_v50 = vadd.f32 %v2174_v46, %v844_v43 }
 0xcce   : > { %v3027_v52 = vpop.f32.mrf.mxu0 }
 0xccf   : > { %v2175_v54 = vadd.f32 %v2800_v41, %v2164_v49  ;;  %v2178_v55 = vadd.f32 %v2176_v50, %v846_v47 }
 0xcd1   : > { %v2182_v30 = vsel %vm876_vm1, %v2178_v55, 0.0  ;;  %v2177_v56 = vadd.f32 %v2175_v54, %v845_v51 }
 0xcd2   : > { %2183 = vadd.xlane.f32.xlu1 %v2182_v30 }
 0xcd3   : > { %v2179_v57 = vadd.f32 %v2177_v56, %v847_v26 }
 0xcd5   : > { %v2185_v58 = vsel %vm876_vm1, %v2179_v57, 0.0 }
 0xcd6   : > { %2186 = vadd.xlane.f32.xlu0 %v2185_v58 }
 0xd5b   : > { %v2184_v59 = vpop.xlane.xlu1 %2183 }
 0xd5c   : > { %v2189_v60 = vmul.f32 0.03125, %v2184_v59 }
 0xd5e   : > { %v2191_v62 = vsub.f32 %v2178_v55, %v2189_v60 }
 0xd5f   : > { %v2187_v61 = vpop.xlane.xlu0 %2186 }
 0xd60   : > { %v2190_v63 = vmul.f32 0.03125, %v2187_v61  ;;  %v2193_v1 = vmul.f32 %v2191_v62, %v2191_v62 }
 0xd62   : > { %v2192_v6 = vsub.f32 %v2179_v57, %v2190_v63  ;;  %v2195_v2 = vsel %vm876_vm1, %v2193_v1, 0.0 }
 0xd63   : > { %2196 = vadd.xlane.f32.xlu0 %v2195_v2 }
 0xd64   : > { %v2194_v4 = vmul.f32 %v2192_v6, %v2192_v6 }
 0xd66   : > { %v2198_v5 = vsel %vm876_vm1, %v2194_v4, 0.0 }
 0xd67   : > { %2199 = vadd.xlane.f32.xlu1 %v2198_v5  ;;  %v2811_v5 = vld [vmem:[%s4549_s25] ss:$0 sm:$0xff]  ;;  %s3523_s25 = sshll.u32 %s3656_s3, 4  ;;  %s3524_s25 = int_to_ptr.vmem [resolvable:$false] %s3523_s25 }
 0xd68   : > { %s3525_s7 = scalar_lea.vmem %s3524_s25, 512  ;;  %p3526_p8 = scmp.lt.s32.totalorder %s4393_s18, %s3524_s25 }
 0xd69   : > { %p3527_p11 = scmp.lt.s32.totalorder %s3525_s7, %s3519_s21 }
 0xd6b   : > { %p3528_p1 = por %p3527_p11, %p3526_p8 }
 0xd6d   : > { %p3529_p3 = pnand %p3528_p1, %p3522_p7 }
 0xdec   : > { %v2197_v7 = vpop.xlane.xlu0 %2196 }
 0xded   : > { %v2201_v37 = vmul.f32 0.03125, %v2197_v7 }
 0xdef   : > { %v2203_v17 = vadd.f32 1e-05, %v2201_v37 }
 0xdf0   : > { %v2200_v8 = vpop.xlane.xlu1 %2199 }
 0xdf1   : > { %3243 = vrsqrt.f32 %v2203_v17  ;;  %v2202_v10 = vmul.f32 0.03125, %v2200_v8  ;;  %v2409_v8 = vld [vmem:[%s4551_s4] sm:$0x1] }
 0xdf3   : > { %v2204_v45 = vadd.f32 1e-05, %v2202_v10 }
 0xdf5   : > { %3245 = vrsqrt.f32 %v2204_v45 }
 0xdfe   : > { %v3244_v12 = vpop.eup %3243 }
 0xdff   : > { %v2207_v13 = vmul.f32 %v3244_v12, %v2191_v62 }
 0xe01   : > { %v2215_v16 = vmul.f32 %v2801_v14, %v2207_v13 }
 0xe02   : > { %v3246_v18 = vpop.eup %3245 }
 0xe03   : > { %v2208_v39 = vmul.f32 %v3246_v18, %v2192_v6  ;;  %v2223_v20 = vadd.f32 %v2802_v9, %v2215_v16 }
 0xe05   : > { %v2216_v19 = vmul.f32 %v2801_v14, %v2208_v39 }
 0xe07   : > { %v2224_v21 = vadd.f32 %v2802_v9, %v2216_v19 }
 0xe09   : > { %v2225_v22 = vpack.c.bf16 %v2224_v21, %v2223_v20 }
 0xe0b   : > { %3033 = vmatmul.mubr.msk.bf16.vlgmr.msra.gmra.mxu1 %vm876_vm1, %v2225_v22 }
 0xe0c   : > { %3048 = vmatprep.mubr.msk.f32.mxu1 %vm3652_vm0, %v3651_v0 }
 0xecb   : > { %v2286_v24 = vpop.f32.mrf.mxu1 }
 0xecc   : > { %v2287_v28 = vadd.f32 %v2803_v38, %v2286_v24 }
 0xecd   : > { %v3034_v25 = vpop.f32.mrf.mxu1 }
 0xece   : > { %v2293_v32 = vmax.f32 %v2287_v28, 0.0 }
 0xecf   : > { %v2289_v29 = vpop.f32.mrf.mxu1 }
 0xed0   : > { %v2290_v31 = vadd.f32 %v2803_v38, %v2289_v29 }
 0xed1   : > { %v3035_v15 = vpop.f32.mrf.mxu1 }
 0xed2   : > { %v2294_v33 = vmax.f32 %v2290_v31, 0.0 }
 0xed4   : > { %v2295_v11 = vpack.c.bf16 %v2294_v33, %v2293_v32 }
 0xed6   : > { %3041 = vmatmul.mubr.msk.bf16.vlgmr.msra.gmra.mxu0 %vm876_vm1, %v2295_v11 }
 0xf96   : > { %v2356_v35 = vpop.f32.mrf.mxu0 }
 0xf97   : > { %v2357_v36 = vadd.f32 %v2807_v3, %v2356_v35 }
 0xf98   : > { %v3042_v40 = vpop.f32.mrf.mxu0 }
 0xf99   : > { %v2363_v41 = vadd.f32 %v2357_v36, %v2223_v20 }
 0xf9a   : > { %v2359_v42 = vpop.f32.mrf.mxu0 }
 0xf9b   : > { %v2360_v43 = vadd.f32 %v2807_v3, %v2359_v42  ;;  %v2367_v44 = vsel %vm876_vm1, %v2363_v41, 0.0 }
 0xf9c   : > { %2368 = vadd.xlane.f32.xlu1 %v2367_v44  ;;  %v3043_v46 = vpop.f32.mrf.mxu0 }
 0xf9d   : > { %v2364_v47 = vadd.f32 %v2360_v43, %v2224_v21 }
 0xf9f   : > { %v2370_v48 = vsel %vm876_vm1, %v2364_v47, 0.0 }
 0xfa0   : > { %2371 = vadd.xlane.f32.xlu0 %v2370_v48 }
0x1025   : > { %v2369_v49 = vpop.xlane.xlu1 %2368 }
0x1026   : > { %v2373_v50 = vmul.f32 0.03125, %v2369_v49 }
0x1028   : > { %v2375_v51 = vsub.f32 %v2363_v41, %v2373_v50 }
0x1029   : > { %v2372_v52 = vpop.xlane.xlu0 %2371 }
0x102a   : > { %v2374_v54 = vmul.f32 0.03125, %v2372_v52  ;;  %v2377_v55 = vmul.f32 %v2375_v51, %v2375_v51 }
0x102c   : > { %v2376_v26 = vsub.f32 %v2364_v47, %v2374_v54  ;;  %v2379_v30 = vsel %vm876_vm1, %v2377_v55, 0.0 }
0x102d   : > { %2380 = vadd.xlane.f32.xlu1 %v2379_v30 }
0x102e   : > { %v2378_v56 = vmul.f32 %v2376_v26, %v2376_v26 }
0x1030   : > { %v2382_v57 = vsel %vm876_vm1, %v2378_v56, 0.0 }
0x1031   : > { %2383 = vadd.xlane.f32.xlu0 %v2382_v57 }
0x10b6   : > { %v2381_v58 = vpop.xlane.xlu1 %2380 }
0x10b7   : > { %v2385_v59 = vmul.f32 0.03125, %v2381_v58 }
0x10b9   : > { %v2387_v60 = vadd.f32 1e-05, %v2385_v59 }
0x10ba   : > { %v2384_v62 = vpop.xlane.xlu0 %2383 }
0x10bb   : > { %v2386_v61 = vmul.f32 0.03125, %v2384_v62  ;;  %3247 = vrsqrt.f32 %v2387_v60 }
0x10bd   : > { %v2388_v63 = vadd.f32 1e-05, %v2386_v61 }
0x10bf   : > { %3249 = vrsqrt.f32 %v2388_v63 }
0x10c8   : > { %v3248_v1 = vpop.eup %3247 }
0x10c9   : > { %v2391_v2 = vmul.f32 %v3248_v1, %v2375_v51 }
0x10cb   : > { %v2399_v37 = vmul.f32 %v2811_v5, %v2391_v2 }
0x10cc   : > { %v3250_v6 = vpop.eup %3249 }
0x10cd   : > { %v2392_v4 = vmul.f32 %v3250_v6, %v2376_v26  ;;  %v2407_v17 = vadd.f32 %v2812_v53, %v2399_v37 }
0x10cf   : > { %v2400_v34 = vmul.f32 %v2811_v5, %v2392_v4 }
0x10d1   : > { %v2408_v7 = vadd.f32 %v2812_v53, %v2400_v34 }
0x10d3   : > { %3045 = vmatpush3.xpose.msk.msra.mxu1 %vm876_vm1, %v2408_v7 }
0x10d4   : > { %3046 = vmatprep.subr.mxu1 %v3651_v0 }
0x10d7   : > { %3047 = vmatpush3.xpose.msk.msra.mxu1 %vm876_vm1, %v2407_v17 }
0x10da   : > { %3049 = vmatmul.mubr.msk.f32.vlgmr.msra.gmra.mxu1 %vm876_vm1, %v2409_v8 }
0x10db   : > { %3532 = shalt.err (!%p3529_p3)
}
0x10dc   : > { %s3533_s19 = scalar_lea.hbm %s4391_s12, 256  ;;  %s3537_s24 = scalar_lea.hbm %s4552_s17, 512 }
0x10dd   : > { %p3534_p4 = scmp.ne.s32.totalorder %s4391_s12, %s3533_s19  ;;  %p3538_p9 = scmp.lt.s32.totalorder %s4391_s12, %s4552_s17 }
0x10de   : > { %p3539_p10 = scmp.lt.s32.totalorder %s3537_s24, %s3533_s19 }
0x10df   : > { %p3535_p0 = pnand %p3534_p4, %p4553_p5 }
0x10e0   : > { %p3540_p12 = por %p3539_p10, %p3538_p9 }
0x10e1   : > { %p3536_p6 = pneg %p3535_p0 }
0x10e3   : > { %p3541_p2 = pnand %p3540_p12, %p3536_p6 }
0x10e5   : > { %3544 = shalt.err (!%p3541_p2)
}
0x10e6   : > { %s3657_s1 = smov 128   ;;  %s3658_s20 = smov 8   ;;  %vm2497_vm5 = vcmask 122880  }
0x10e7   : > { %3088 = dma.vmem_to_hbm [thread:$0]  (%p4553_p5), %s4393_s18, 256, %s4391_s12, %s2508_s30, %s3657_s1, %s3657_s1, %s3658_s20  }
0x10e8   : > { %s2410_s22 = sld [smem:[#allocation2]]  ;;  %s2818_s21 = sshll.u32 %s3794_s0, 4 }
0x10e9   : > { %s828_s3 = scalar_lea.vmem [#allocation20], %s4016_s23  ;;  %s4554_s2 = sld [smem:[#allocation48_spill]] }
0x10ea   : > { %s2521_s25 = sshll.u32 %s828_s3, 4  ;;  %s2504_s12 = scalar_lea.sflag [#allocation5], %s4016_s23  ;;  %s2522_s25 = int_to_ptr.vmem [resolvable:$true] %s2521_s25 }
0x10eb   : > { %s3545_s30 = scalar_lea.vmem %s2522_s25, 16  ;;  %s3659_s29 = smov [#allocation20]  }
0x10ec   : > { %p3546_p13 = scmp.ne.s32.totalorder %s2522_s25, %s3545_s30  ;;  %s3549_s24 = sshll.u32 %s3659_s29, 4  ;;  %s3550_s24 = int_to_ptr.vmem [resolvable:$false] %s3549_s24 }
0x10ed   : > { %s3551_s0 = scalar_lea.vmem %s3550_s24, 32  ;;  %p3552_p11 = scmp.lt.s32.totalorder %s2522_s25, %s3550_s24 }
0x10ee   : > { %v2411_v0 = vstv %s2410_s22  ;;  %p3547_p7 = pnand %p3546_p13, %p4553_p5  ;;  %p3553_p1 = scmp.lt.s32.totalorder %s3551_s0, %s3545_s30 }
0x10ef   : > { %s4423_s18 = scalar_lea.hbm %s4554_s2, %s2818_s21 }
0x10f0   : > { %p3548_p8 = pneg %p3547_p7  ;;  %p3554_p3 = por %p3553_p1, %p3552_p11 }
0x10f2   : > { %p3555_p4 = pnand %p3554_p3, %p3548_p8 }
0x119a   : > { %v2487_v10 = vpop.f32.mrf.mxu1 }
0x119b   : > { %v2488_v45 = vadd.f32 %v2487_v10, %v2411_v0 }
0x119c   : > { %v3050_v12 = vpop.f32.mrf.mxu1 }
0x119d   : > { %v2816_v13 = vmul.f32 -1.442695, %v2488_v45 }
0x119f   : > { %3251 = vpow2.f32 %v2816_v13 }
0x11ac   : > { %v3252_v14 = vpop.eup %3251 }
0x11ad   : > { %v2494_v18 = vadd.f32 1.0, %v3252_v14 }
0x11af   : > { %3253 = vrcp.f32 %v2494_v18 }
0x11bc   : > { %v3254_v39 = vpop.eup %3253 }
0x11bd   : > { %2498 = vst.msk [vmem:[%s828_s3] sm:$0x1] %vm2497_vm5, %v3254_v39 }
0x11be   : > { %3558 = shalt.err (!%p3555_p4)
}
0x11bf   : > { %s3559_s6 = scalar_lea.hbm %s4423_s18, 16  ;;  %s3563_s1 = scalar_lea.hbm %s4554_s2, 32 }
0x11c0   : > { %p3560_p0 = scmp.ne.s32.totalorder %s4423_s18, %s3559_s6  ;;  %p3564_p10 = scmp.lt.s32.totalorder %s4423_s18, %s4554_s2 }
0x11c1   : > { %p3565_p12 = scmp.lt.s32.totalorder %s3563_s1, %s3559_s6 }
0x11c2   : > { %p3561_p6 = pnand %p3560_p0, %p4553_p5 }
0x11c3   : > { %p3566_p2 = por %p3565_p12, %p3564_p10 }
0x11c4   : > { %p3562_p9 = pneg %p3561_p6 }
0x11c6   : > { %p3567_p13 = pnand %p3566_p2, %p3562_p9 }
0x11c8   : > { %3570 = shalt.err (!%p3567_p13)
}
0x11c9   : > { %3087 = dma.vmem_to_hbm [thread:$0]  (%p4553_p5), %s2522_s25, 16, %s4423_s18, %s2504_s12  }
0x11ca PF: > { %s2549_s21 = sand.u32 1, %s3625_s26   ;;  %p4555_p7 = scmp.ne.s32.totalorder %s4530_s5, 0 }
0x11cb   : > { %p4556_p8 = scmp.ge.s32.totalorder %s3637_s28, 2  ;;  %s2550_s3 = scalar_lea.sflag [#allocation5], %s2549_s21 }
0x11cd   : > { %p3124_p11 = pnand %p4556_p8, %p4555_p7 }
0x11cf   : > { %p3125_p1 = pneg %p3124_p11 }
0x11d1   : > { %3616 = dma.done.wait (%p3125_p1), %s2550_s3, 16  }
0x11d2   : > { %3618 = vsyncadd (%p3125_p1), %s2550_s3, 4294967280  ;;  %s2558_s7 = scalar_lea.sflag [#allocation22], %s2549_s21 }
0x11d3   : > { %3620 = dma.done.wait (%p3125_p1), %s2558_s7, 256  }
0x11d4   : > { %3622 = vsyncadd (%p3125_p1), %s2558_s7, 4294967040  ;;  %s4557_s28 = sld [smem:[#allocation33_spill]]  ;;  %s4560_s26 = smov %s3629_s27 }
0x11d5   : > { %s4558_s16 = sld [smem:[#allocation32_spill]] }
0x11d6   : > { %s4559_s3 = sld [smem:[#allocation34_spill]] }
0x11da   : > { %p46_p5 = scmp.ge.s32.totalorder %s4557_s28, 4  }
0x11db   : > { %s4561_s27 = smov %s4558_s16 }
0x11dc   :  { %48 = sbr.rel (!%p46_p5) target bundleno = 30 (0x1e), region = 210 }
0x11e1   :  { %2563 = vsyncpa [#allocation4], 1 }
0x11e2   :  { %2565 = vsyncpa [#allocation4 + $0x1], 1 }
0x11e3   :  { %2566 = vsyncpa [#allocation7], 1 }
0x11e4   :  { %2568 = vsyncpa [#allocation7 + $0x1], 1 }
0x11e5   :  { %2569 = vsyncpa [#allocation10], 1 }
0x11e6   :  { %2570 = vsyncpa [#allocation13], 1 }
0x11e7   :  { %2571 = vsyncpa [#allocation16], 1 }
0x11e8   :  { %2572 = vsyncpa [#allocation19], 1 }
0x11e9   :  { %2573 = vsyncpa [#allocation5], 1 }
0x11ea   :  { %2575 = vsyncpa [#allocation5 + $0x1], 1 }
0x11eb   :  { %2576 = vsyncpa [#allocation22], 1 }
0x11ec   :  { %2578 = vsyncpa [#allocation22 + $0x1], 1 }

</bundles_post_ra>
